<compile_context>
chip_gen: v7x
topology: tpu7x:2x2x1
jax: 0.10.0
libtpu: 0.0.40
codegen_flags: <defaults>
</compile_context>

<pallas_src>
import functools
import jax
import jax.numpy as jnp
from jax.experimental import pallas as pl
from jax.experimental.pallas import tpu as pltpu

LANE = 128       # channel dims padded to multiples of the TPU lane width
TM_MAX = 256     # row-tile cap (multiple of 8)
TK_MAX = 1536    # reduction-tile cap (multiple of 128)


def _round_up(x, m):
    return (x + m - 1) // m * m


def _pick_tm(m):
    """Row tile: as large as possible (<=TM_MAX), but >=2 tiles when cleanly
    possible so both v7x TensorCores get work."""
    if m > TM_MAX:
        return TM_MAX                      # ragged last tile: OOB stores dropped
    if m >= 128 and m % 16 == 0:
        return m // 2
    return m                               # full-dim block is always legal


def _pick_tk(kd):
    """K tile: single step for small Kd, else a multiple-of-128 divisor of Kd."""
    if kd <= TK_MAX:
        return kd
    for tk in range(TK_MAX, 0, -LANE):
        if kd % tk == 0:
            return tk
    return kd


def _nbytes(a):
    return int(a.size) * a.dtype.itemsize


def _silu(z):
    # exp and the approximate reciprocal both run on the EUP slot (frees VALU).
    return z * pl.reciprocal(1.0 + jnp.exp(-z), approx=True)


# ------------------------------ Pallas kernels -------------------------------
def _conv_kernel(p_ref, w_ref, b_ref, o_ref, acc_ref):
    # out = SiLU(patches @ w + b); grid = (row tile i, out-col tile j, k-reduction)
    @pl.when(pl.program_id(2) == 0)
    def _():
        acc_ref[...] = jnp.zeros_like(acc_ref)

    acc_ref[...] += jnp.dot(p_ref[...], w_ref[...],
                            preferred_element_type=jnp.float32)

    @pl.when(pl.program_id(2) == pl.num_programs(2) - 1)
    def _():
        z = acc_ref[...] + b_ref[...]
        o_ref[...] = _silu(z).astype(o_ref.dtype)


def _conv_res_kernel(p_ref, w_ref, b_ref, r_ref, o_ref, acc_ref):
    # out = SiLU(patches @ w + b) + residual   (YOLOv5 Bottleneck shortcut)
    @pl.when(pl.program_id(2) == 0)
    def _():
        acc_ref[...] = jnp.zeros_like(acc_ref)

    acc_ref[...] += jnp.dot(p_ref[...], w_ref[...],
                            preferred_element_type=jnp.float32)

    @pl.when(pl.program_id(2) == pl.num_programs(2) - 1)
    def _():
        z = acc_ref[...] + b_ref[...]
        o_ref[...] = (_silu(z) + r_ref[...].astype(jnp.float32)).astype(o_ref.dtype)


def _c3_head_kernel(x_ref, w1_ref, b1_ref, wm_ref, bm_ref, y1_ref, t_ref):
    # Fused C3.cv1 (1x1) + first Bottleneck.cv1 (1x1): emits y1 and t.
    z1 = jnp.dot(x_ref[...], w1_ref[...], preferred_element_type=jnp.float32)
    y1 = _silu(z1 + b1_ref[...])
    y1_ref[...] = y1.astype(y1_ref.dtype)
    z2 = jnp.dot(y1.astype(wm_ref.dtype), wm_ref[...],
                 preferred_element_type=jnp.float32)
    t_ref[...] = _silu(z2 + bm_ref[...]).astype(t_ref.dtype)


def _c3_tail_kernel(x_ref, y1_ref, w2_ref, b2_ref, w3a_ref, w3b_ref, b3_ref, o_ref):
    # Fused C3.cv2 (1x1) + concat + C3.cv3 (1x1): the concat is realized as a
    # split-weight dual matmul, so y2 / the concat never touch HBM.
    z2 = jnp.dot(x_ref[...], w2_ref[...], preferred_element_type=jnp.float32)
    y2 = _silu(z2 + b2_ref[...]).astype(w3b_ref.dtype)
    acc = jnp.dot(y1_ref[...], w3a_ref[...], preferred_element_type=jnp.float32)
    acc += jnp.dot(y2, w3b_ref[...], preferred_element_type=jnp.float32)
    o_ref[...] = _silu(acc + b3_ref[...]).astype(o_ref.dtype)


# ------------------------------ call wrappers ---------------------------------
def _conv_call(patches, w, b, residual=None, out_dtype=jnp.bfloat16):
    """out = SiLU(patches @ w + b) [+ residual], tiled over (rows, cols, K)."""
    M, Kd = patches.shape
    Cp = w.shape[1]                                   # padded: multiple of 128
    tm, tk = _pick_tm(M), _pick_tk(Kd)
    tn = 256 if Cp % 256 == 0 else LANE
    grid = (pl.cdiv(M, tm), Cp // tn, pl.cdiv(Kd, tk))

    in_specs = [
        pl.BlockSpec((tm, tk), lambda i, j, k: (i, k)),
        pl.BlockSpec((tk, tn), lambda i, j, k: (k, j)),
        pl.BlockSpec((1, tn), lambda i, j, k: (0, j)),
    ]
    args = [patches, w, b]
    if residual is None:
        kernel = _conv_kernel
    else:
        kernel = _conv_res_kernel
        in_specs.append(pl.BlockSpec((tm, tn), lambda i, j, k: (i, j)))
        args.append(residual)

    out_bytes = M * Cp * jnp.dtype(out_dtype).itemsize
    cost = pl.CostEstimate(
        flops=2 * M * Kd * Cp + 4 * M * Cp,
        transcendentals=M * Cp,
        bytes_accessed=int(sum(_nbytes(a) for a in args) + out_bytes))

    return pl.pallas_call(
        kernel,
        out_shape=jax.ShapeDtypeStruct((M, Cp), out_dtype),
        grid=grid,
        in_specs=in_specs,
        out_specs=pl.BlockSpec((tm, tn), lambda i, j, k: (i, j)),
        scratch_shapes=[pltpu.VMEM((tm, tn), jnp.float32)],
        compiler_params=pltpu.CompilerParams(
            dimension_semantics=("parallel", "parallel", "arbitrary")),
        cost_estimate=cost,
    )(*args)


def _c3_head_call(x2d, w1, b1, wm, bm):
    M, Cin = x2d.shape
    Cmid = w1.shape[1]
    tm = _pick_tm(M)
    cost = pl.CostEstimate(
        flops=2 * M * Cmid * (Cin + Cmid) + 8 * M * Cmid,
        transcendentals=2 * M * Cmid,
        bytes_accessed=int(_nbytes(x2d) + _nbytes(w1) + _nbytes(wm)
                           + _nbytes(b1) + _nbytes(bm) + 4 * M * Cmid))
    return pl.pallas_call(
        _c3_head_kernel,
        out_shape=(jax.ShapeDtypeStruct((M, Cmid), jnp.bfloat16),
                   jax.ShapeDtypeStruct((M, Cmid), jnp.bfloat16)),
        grid=(pl.cdiv(M, tm),),
        in_specs=[
            pl.BlockSpec((tm, Cin), lambda i: (i, 0)),
            pl.BlockSpec((Cin, Cmid), lambda i: (0, 0)),
            pl.BlockSpec((1, Cmid), lambda i: (0, 0)),
            pl.BlockSpec((Cmid, Cmid), lambda i: (0, 0)),
            pl.BlockSpec((1, Cmid), lambda i: (0, 0)),
        ],
        out_specs=(pl.BlockSpec((tm, Cmid), lambda i: (i, 0)),
                   pl.BlockSpec((tm, Cmid), lambda i: (i, 0))),
        compiler_params=pltpu.CompilerParams(dimension_semantics=("parallel",)),
        cost_estimate=cost,
    )(x2d, w1, b1, wm, bm)


def _c3_tail_call(x2d, y1_2d, w2, b2, w3a, w3b, b3, out_dtype=jnp.float32):
    M, Cx = x2d.shape
    Cmid = w2.shape[1]
    Cout_p = w3a.shape[1]
    tm = _pick_tm(M)
    cost = pl.CostEstimate(
        flops=2 * M * (Cx * Cmid + 2 * Cmid * Cout_p) + 8 * M * Cout_p,
        transcendentals=M * (Cmid + Cout_p),
        bytes_accessed=int(_nbytes(x2d) + _nbytes(y1_2d) + _nbytes(w2)
                           + _nbytes(b2) + _nbytes(w3a) + _nbytes(w3b)
                           + _nbytes(b3)
                           + M * Cout_p * jnp.dtype(out_dtype).itemsize))
    return pl.pallas_call(
        _c3_tail_kernel,
        out_shape=jax.ShapeDtypeStruct((M, Cout_p), out_dtype),
        grid=(pl.cdiv(M, tm),),
        in_specs=[
            pl.BlockSpec((tm, Cx), lambda i: (i, 0)),
            pl.BlockSpec((tm, Cmid), lambda i: (i, 0)),
            pl.BlockSpec((Cx, Cmid), lambda i: (0, 0)),
            pl.BlockSpec((1, Cmid), lambda i: (0, 0)),
            pl.BlockSpec((Cmid, Cout_p), lambda i: (0, 0)),
            pl.BlockSpec((Cmid, Cout_p), lambda i: (0, 0)),
            pl.BlockSpec((1, Cout_p), lambda i: (0, 0)),
        ],
        out_specs=pl.BlockSpec((tm, Cout_p), lambda i: (i, 0)),
        compiler_params=pltpu.CompilerParams(dimension_semantics=("parallel",)),
        cost_estimate=cost,
    )(x2d, y1_2d, w2, b2, w3a, w3b, b3)


# ---------------------------------- JAX glue ----------------------------------
def _im2col(x_nhwc, k, s, p):
    """(N, H, W, C) -> (N*Ho*Wo, k*k*C), row order (di, dj, c)."""
    # TODO(synk): fuse im2col into the 3x3 conv kernel (halo-row DMA with
    # memory_space=pl.ANY) to avoid the ~9x HBM read inflation of the patches.
    N, H, W, C = x_nhwc.shape
    xp = jnp.pad(x_nhwc, ((0, 0), (p, p), (p, p), (0, 0)))
    Ho = (H + 2 * p - k) // s + 1
    Wo = (W + 2 * p - k) // s + 1
    cols = [xp[:, di:di + s * Ho:s, dj:dj + s * Wo:s, :]
            for di in range(k) for dj in range(k)]
    patches = jnp.concatenate(cols, axis=-1)
    return patches.reshape(N * Ho * Wo, k * k * C), N, Ho, Wo


def _conv_bn_silu(x_nhwc, params, k, s, p, residual=None, out_dtype=jnp.bfloat16):
    w, b = params
    if k == 1:
        N, H, W, C = x_nhwc.shape
        patches, Ho, Wo = x_nhwc.reshape(N * H * W, C), H, W
    else:
        patches, N, Ho, Wo = _im2col(x_nhwc, k, s, p)
    Cp = w.shape[1]
    res2d = None if residual is None else residual.reshape(-1, Cp)
    out = _conv_call(patches, w, b, res2d, out_dtype)
    return out.reshape(N, Ho, Wo, Cp)


# --------------------------------- parameters ----------------------------------
def _init_conv(key, cin, cout, k, cin_store=None, bn_eps=1e-3):
    """Conv2d(bias=False) + BatchNorm2d (identity stats) folded, channel-padded.

    cin_store: channel count the *stored* input activation actually has
    (>= cin; the padded input channels get zero weight rows, which is exact).
    cout is padded to a multiple of 128 lanes (zero columns, zero bias)."""
    cin_store = cin if cin_store is None else cin_store
    cout_p = _round_up(cout, LANE)
    w = jax.random.normal(key, (k, k, cin, cout), jnp.float32)
    w = w * (1.0 / (k * k * cin) ** 0.5) / jnp.sqrt(1.0 + bn_eps)   # BN fold
    wp = jnp.zeros((k, k, cin_store, cout_p), jnp.float32)
    wp = wp.at[:, :, :cin, :cout].set(w)
    wp = wp.reshape(k * k * cin_store, cout_p).astype(jnp.bfloat16)
    return wp, jnp.zeros((1, cout_p), jnp.float32)


def _init_cv3(key, c_, cout, c_store, bn_eps=1e-3):
    """C3.cv3 (1x1, 2*c_ -> cout) split into two row blocks for the fused tail."""
    cout_p = _round_up(cout, LANE)
    w = jax.random.normal(key, (2 * c_, cout), jnp.float32)
    w = w * (1.0 / (2 * c_) ** 0.5) / jnp.sqrt(1.0 + bn_eps)
    wa = jnp.zeros((c_store, cout_p), jnp.float32).at[:c_, :cout].set(w[:c_])
    wb = jnp.zeros((c_store, cout_p), jnp.float32).at[:c_, :cout].set(w[c_:])
    return (wa.astype(jnp.bfloat16), wb.astype(jnp.bfloat16),
            jnp.zeros((1, cout_p), jnp.float32))


def init_stage_params(key, stage, num_layers, cin, cout, k):
    c3_stage = (1, 2, 3, 4)
    keys = jax.random.split(key, 4 + 2 * num_layers)
    cout_p = _round_up(cout, LANE)
    params = {"conv": _init_conv(keys[0], cin, cout, k)}
    if stage in c3_stage:
        c_ = cout // 2
        c_p = _round_up(c_, LANE)
        m = []
        for i in range(num_layers):
            m.append({
                "cv1": _init_conv(keys[4 + 2 * i], c_, c_, 1, cin_store=c_p),
                "cv2": _init_conv(keys[5 + 2 * i], c_, c_, 3, cin_store=c_p),
            })
        w3a, w3b, b3 = _init_cv3(keys[3], c_, cout, c_p)
        params["c3"] = {
            "cv1": _init_conv(keys[1], cout, c_, 1, cin_store=cout_p),
            "cv2": _init_conv(keys[2], cout, c_, 1, cin_store=cout_p),
            "cv3a": w3a, "cv3b": w3b, "cv3_b": b3,
            "m": m,
        }
    return params


# ---------------------------------- forward ------------------------------------
@functools.partial(jax.jit, static_argnames=("stage", "k", "s", "cout"))
def stage_forward(x_nchw, params, *, stage, k, s, cout):
    del stage                                            # structure lives in params
    x = jnp.transpose(x_nchw, (0, 2, 3, 1)).astype(jnp.bfloat16)   # NCHW -> NHWC
    has_c3 = "c3" in params
    x = _conv_bn_silu(x, params["conv"], k, s, k // 2,
                      out_dtype=jnp.bfloat16 if has_c3 else jnp.float32)
    if has_c3:
        c3 = params["c3"]
        N, Ho, Wo, Cx = x.shape
        x2d = x.reshape(N * Ho * Wo, Cx)
        # Fused C3.cv1 + Bottleneck[0].cv1.
        y1_2d, t_2d = _c3_head_call(x2d, *c3["cv1"], *c3["m"][0]["cv1"])
        c_p = y1_2d.shape[1]
        y1 = y1_2d.reshape(N, Ho, Wo, c_p)
        t = t_2d.reshape(N, Ho, Wo, c_p)
        for li, bp in enumerate(c3["m"]):
            if li > 0:
                t = _conv_bn_silu(y1, bp["cv1"], 1, 1, 0)
            y1 = _conv_bn_silu(t, bp["cv2"], 3, 1, 1, residual=y1)   # shortcut
        # Fused C3.cv2 + concat + C3.cv3 (final layer emits f32).
        out2d = _c3_tail_call(x2d, y1.reshape(N * Ho * Wo, c_p),
                              *c3["cv2"], c3["cv3a"], c3["cv3b"], c3["cv3_b"])
        x = out2d.reshape(N, Ho, Wo, -1)
    x = x[..., :cout].astype(jnp.float32)                # drop lane padding
    return jnp.transpose(x, (0, 3, 1, 2))                # NHWC -> NCHW


# ------------------------------------ main --------------------------------------
if __name__ == "__main__":
    key = jax.random.PRNGKey(0)
    k_x, k_p = jax.random.split(key)

    # Stage(stage=1, num_layers=1, input_ch=4, output_ch=8, kernel_size=3, stride=2)
    STAGE, NUM_LAYERS, CIN, COUT, KSIZE, STRIDE = 1, 1, 4, 8, 3, 2

    x = jax.random.normal(k_x, (2, CIN, 16, 16), jnp.float32)   # NCHW like PyTorch
    params = init_stage_params(k_p, STAGE, NUM_LAYERS, CIN, COUT, KSIZE)

    out = stage_forward(x, params, stage=STAGE, k=KSIZE, s=STRIDE, cout=COUT)
    out = jax.block_until_ready(out)

    assert out.shape == (2, COUT, 8, 8), out.shape
    assert jnp.isfinite(out).all()
    print("KERNEL_OK")
</pallas_src>

<mosaic_0001>
module attributes {stable_mosaic.version = 11 : i64} {
  func.func @_conv_kernel(%arg0: i32, %arg1: i32, %arg2: i32, %arg3: memref<64x36xbf16, #tpu.memory_space<vmem>>, %arg4: memref<36x128xbf16, #tpu.memory_space<vmem>>, %arg5: memref<1x128xf32, #tpu.memory_space<vmem>>, %arg6: memref<64x128xbf16, #tpu.memory_space<vmem>>, %arg7: memref<64x128xf32, #tpu.memory_space<vmem>>) attributes {dimension_semantics = [#tpu.dimension_semantics<parallel>, #tpu.dimension_semantics<parallel>, #tpu.dimension_semantics<arbitrary>], iteration_bounds = array<i64: 2, 1, 1>, scalar_prefetch = 0 : i64, scratch_operands = 1 : i64, tpu.core_type = #tpu.core_type<tc>, window_params = [{transform_indices = @transform_0, window_bounds = array<i64: 64, 36>}, {transform_indices = @transform_1, window_bounds = array<i64: 36, 128>}, {transform_indices = @transform_2, window_bounds = array<i64: 1, 128>}, {transform_indices = @transform_3, window_bounds = array<i64: 64, 128>}]} {
    %c0_i32 = arith.constant 0 : i32
    %0 = arith.cmpi eq, %arg2, %c0_i32 : i32
    %1 = arith.extui %0 : i1 to i32
    %c0_i32_0 = arith.constant 0 : i32
    %2 = arith.cmpi ne, %1, %c0_i32_0 : i32
    scf.if %2 {
      %cst_10 = arith.constant 0.000000e+00 : f32
      %12 = vector.broadcast %cst_10 : f32 to vector<64x128xf32>
      %c0_11 = arith.constant 0 : index
      %c0_12 = arith.constant 0 : index
      %13 = vector.load %arg7[%c0_11, %c0_12] : memref<64x128xf32, #tpu.memory_space<vmem>>, vector<64x128xf32>
      tpu.vector_store %arg7[%c0_11, %c0_12], %12 {strides = array<i32>} : memref<64x128xf32, #tpu.memory_space<vmem>>, vector<64x128xf32>,
    } else {
    }
    %c0 = arith.constant 0 : index
    %c0_1 = arith.constant 0 : index
    %3 = vector.load %arg7[%c0, %c0_1] : memref<64x128xf32, #tpu.memory_space<vmem>>, vector<64x128xf32>
    %c0_2 = arith.constant 0 : index
    %c0_3 = arith.constant 0 : index
    %4 = vector.load %arg3[%c0_2, %c0_3] : memref<64x36xbf16, #tpu.memory_space<vmem>>, vector<64x36xbf16>
    %c0_4 = arith.constant 0 : index
    %c0_5 = arith.constant 0 : index
    %5 = vector.load %arg4[%c0_4, %c0_5] : memref<36x128xbf16, #tpu.memory_space<vmem>>, vector<36x128xbf16>
    %cst = arith.constant dense<0.000000e+00> : vector<64x128xf32>
    %6 = tpu.matmul %4, %5, %cst {dimension_numbers = #tpu.dot_dimension_numbers<[1], [0], [0], [1], [0, 0, 1, 1], [], []>} : vector<64x36xbf16>, vector<36x128xbf16>, vector<64x128xf32> -> vector<64x128xf32>
    %7 = arith.addf %3, %6 : vector<64x128xf32>
    %c0_6 = arith.constant 0 : index
    %c0_7 = arith.constant 0 : index
    %8 = vector.load %arg7[%c0_6, %c0_7] : memref<64x128xf32, #tpu.memory_space<vmem>>, vector<64x128xf32>
    tpu.vector_store %arg7[%c0_6, %c0_7], %7 {strides = array<i32>} : memref<64x128xf32, #tpu.memory_space<vmem>>, vector<64x128xf32>,
    %c0_i32_8 = arith.constant 0 : i32
    %9 = arith.cmpi eq, %arg2, %c0_i32_8 : i32
    %10 = arith.extui %9 : i1 to i32
    %c0_i32_9 = arith.constant 0 : i32
    %11 = arith.cmpi ne, %10, %c0_i32_9 : i32
    scf.if %11 {
      %c0_10 = arith.constant 0 : index
      %c0_11 = arith.constant 0 : index
      %12 = vector.load %arg7[%c0_10, %c0_11] : memref<64x128xf32, #tpu.memory_space<vmem>>, vector<64x128xf32>
      %c0_12 = arith.constant 0 : index
      %c0_13 = arith.constant 0 : index
      %13 = vector.load %arg5[%c0_12, %c0_13] : memref<1x128xf32, #tpu.memory_space<vmem>>, vector<1x128xf32>
      %14 = vector.broadcast %13 : vector<1x128xf32> to vector<64x128xf32>
      %15 = arith.addf %12, %14 : vector<64x128xf32>
      %cst_14 = arith.constant 0.000000e+00 : f32
      %16 = vector.broadcast %cst_14 : f32 to vector<64x128xf32>
      %17 = arith.subf %16, %15 : vector<64x128xf32>
      %18 = math.exp %17 : vector<64x128xf32>
      %cst_15 = arith.constant 1.000000e+00 : f32
      %19 = vector.broadcast %cst_15 : f32 to vector<64x128xf32>
      %20 = arith.addf %19, %18 : vector<64x128xf32>
      %21 = tpu.reciprocal %20 {approx = true} : vector<64x128xf32> -> vector<64x128xf32>
      %22 = arith.mulf %15, %21 : vector<64x128xf32>
      %23 = arith.truncf %22 : vector<64x128xf32> to vector<64x128xbf16>
      %c0_16 = arith.constant 0 : index
      %c0_17 = arith.constant 0 : index
      %24 = vector.load %arg6[%c0_16, %c0_17] : memref<64x128xbf16, #tpu.memory_space<vmem>>, vector<64x128xbf16>
      tpu.vector_store %arg6[%c0_16, %c0_17], %23 {strides = array<i32>} : memref<64x128xbf16, #tpu.memory_space<vmem>>, vector<64x128xbf16>,
    } else {
    }
    return
  }
  func.func @transform_0(%arg0: i32, %arg1: i32, %arg2: i32) -> (i32, i32) {
    %c0_i32 = arith.constant 0 : i32
    return %arg0, %arg2 : i32, i32
  }
  func.func @transform_1(%arg0: i32, %arg1: i32, %arg2: i32) -> (i32, i32) {
    %c0_i32 = arith.constant 0 : i32
    return %arg2, %arg1 : i32, i32
  }
  func.func @transform_2(%arg0: i32, %arg1: i32, %arg2: i32) -> (i32, i32) {
    %c0_i32 = arith.constant 0 : i32
    %c0_i32_0 = arith.constant 0 : i32
    return %c0_i32, %arg1 : i32, i32
  }
  func.func @transform_3(%arg0: i32, %arg1: i32, %arg2: i32) -> (i32, i32) {
    %c0_i32 = arith.constant 0 : i32
    return %arg0, %arg1 : i32, i32
  }
}

module attributes {stable_mosaic.version = 11 : i64} {
  func.func @_c3_head_kernel(%arg0: i32, %arg1: memref<64x128xbf16, #tpu.memory_space<vmem>>, %arg2: memref<128x128xbf16, #tpu.memory_space<vmem>>, %arg3: memref<1x128xf32, #tpu.memory_space<vmem>>, %arg4: memref<128x128xbf16, #tpu.memory_space<vmem>>, %arg5: memref<1x128xf32, #tpu.memory_space<vmem>>, %arg6: memref<64x128xbf16, #tpu.memory_space<vmem>>, %arg7: memref<64x128xbf16, #tpu.memory_space<vmem>>) attributes {dimension_semantics = [#tpu.dimension_semantics<parallel>], iteration_bounds = array<i64: 2>, scalar_prefetch = 0 : i64, scratch_operands = 0 : i64, tpu.core_type = #tpu.core_type<tc>, window_params = [{transform_indices = @transform_0, window_bounds = array<i64: 64, 128>}, {pipeline_mode = #tpu.pipeline_mode<synchronous>, transform_indices = @transform_1, window_bounds = array<i64: 128, 128>}, {pipeline_mode = #tpu.pipeline_mode<synchronous>, transform_indices = @transform_2, window_bounds = array<i64: 1, 128>}, {pipeline_mode = #tpu.pipeline_mode<synchronous>, transform_indices = @transform_3, window_bounds = array<i64: 128, 128>}, {pipeline_mode = #tpu.pipeline_mode<synchronous>, transform_indices = @transform_4, window_bounds = array<i64: 1, 128>}, {transform_indices = @transform_5, window_bounds = array<i64: 64, 128>}, {transform_indices = @transform_6, window_bounds = array<i64: 64, 128>}]} {
    %c0 = arith.constant 0 : index
    %c0_0 = arith.constant 0 : index
    %0 = vector.load %arg1[%c0, %c0_0] : memref<64x128xbf16, #tpu.memory_space<vmem>>, vector<64x128xbf16>
    %c0_1 = arith.constant 0 : index
    %c0_2 = arith.constant 0 : index
    %1 = vector.load %arg2[%c0_1, %c0_2] : memref<128x128xbf16, #tpu.memory_space<vmem>>, vector<128x128xbf16>
    %cst = arith.constant dense<0.000000e+00> : vector<64x128xf32>
    %2 = tpu.matmul %0, %1, %cst {dimension_numbers = #tpu.dot_dimension_numbers<[1], [0], [0], [1], [0, 0, 1, 1], [], []>} : vector<64x128xbf16>, vector<128x128xbf16>, vector<64x128xf32> -> vector<64x128xf32>
    %c0_3 = arith.constant 0 : index
    %c0_4 = arith.constant 0 : index
    %3 = vector.load %arg3[%c0_3, %c0_4] : memref<1x128xf32, #tpu.memory_space<vmem>>, vector<1x128xf32>
    %4 = vector.broadcast %3 : vector<1x128xf32> to vector<64x128xf32>
    %5 = arith.addf %2, %4 : vector<64x128xf32>
    %cst_5 = arith.constant 0.000000e+00 : f32
    %6 = vector.broadcast %cst_5 : f32 to vector<64x128xf32>
    %7 = arith.subf %6, %5 : vector<64x128xf32>
    %8 = math.exp %7 : vector<64x128xf32>
    %cst_6 = arith.constant 1.000000e+00 : f32
    %9 = vector.broadcast %cst_6 : f32 to vector<64x128xf32>
    %10 = arith.addf %9, %8 : vector<64x128xf32>
    %11 = tpu.reciprocal %10 {approx = true} : vector<64x128xf32> -> vector<64x128xf32>
    %12 = arith.mulf %5, %11 : vector<64x128xf32>
    %13 = arith.truncf %12 : vector<64x128xf32> to vector<64x128xbf16>
    %c0_7 = arith.constant 0 : index
    %c0_8 = arith.constant 0 : index
    %14 = vector.load %arg6[%c0_7, %c0_8] : memref<64x128xbf16, #tpu.memory_space<vmem>>, vector<64x128xbf16>
    tpu.vector_store %arg6[%c0_7, %c0_8], %13 {strides = array<i32>} : memref<64x128xbf16, #tpu.memory_space<vmem>>, vector<64x128xbf16>,
    %15 = arith.truncf %12 : vector<64x128xf32> to vector<64x128xbf16>
    %c0_9 = arith.constant 0 : index
    %c0_10 = arith.constant 0 : index
    %16 = vector.load %arg4[%c0_9, %c0_10] : memref<128x128xbf16, #tpu.memory_space<vmem>>, vector<128x128xbf16>
    %cst_11 = arith.constant dense<0.000000e+00> : vector<64x128xf32>
    %17 = tpu.matmul %15, %16, %cst_11 {dimension_numbers = #tpu.dot_dimension_numbers<[1], [0], [0], [1], [0, 0, 1, 1], [], []>} : vector<64x128xbf16>, vector<128x128xbf16>, vector<64x128xf32> -> vector<64x128xf32>
    %c0_12 = arith.constant 0 : index
    %c0_13 = arith.constant 0 : index
    %18 = vector.load %arg5[%c0_12, %c0_13] : memref<1x128xf32, #tpu.memory_space<vmem>>, vector<1x128xf32>
    %19 = vector.broadcast %18 : vector<1x128xf32> to vector<64x128xf32>
    %20 = arith.addf %17, %19 : vector<64x128xf32>
    %cst_14 = arith.constant 0.000000e+00 : f32
    %21 = vector.broadcast %cst_14 : f32 to vector<64x128xf32>
    %22 = arith.subf %21, %20 : vector<64x128xf32>
    %23 = math.exp %22 : vector<64x128xf32>
    %cst_15 = arith.constant 1.000000e+00 : f32
    %24 = vector.broadcast %cst_15 : f32 to vector<64x128xf32>
    %25 = arith.addf %24, %23 : vector<64x128xf32>
    %26 = tpu.reciprocal %25 {approx = true} : vector<64x128xf32> -> vector<64x128xf32>
    %27 = arith.mulf %20, %26 : vector<64x128xf32>
    %28 = arith.truncf %27 : vector<64x128xf32> to vector<64x128xbf16>
    %c0_16 = arith.constant 0 : index
    %c0_17 = arith.constant 0 : index
    %29 = vector.load %arg7[%c0_16, %c0_17] : memref<64x128xbf16, #tpu.memory_space<vmem>>, vector<64x128xbf16>
    tpu.vector_store %arg7[%c0_16, %c0_17], %28 {strides = array<i32>} : memref<64x128xbf16, #tpu.memory_space<vmem>>, vector<64x128xbf16>,
    return
  }
  func.func @transform_0(%arg0: i32) -> (i32, i32) {
    %c0_i32 = arith.constant 0 : i32
    %c0_i32_0 = arith.constant 0 : i32
    return %arg0, %c0_i32 : i32, i32
  }
  func.func @transform_1(%arg0: i32) -> (i32, i32) {
    %c0_i32 = arith.constant 0 : i32
    %c0_i32_0 = arith.constant 0 : i32
    %c0_i32_1 = arith.constant 0 : i32
    return %c0_i32, %c0_i32_0 : i32, i32
  }
  func.func @transform_2(%arg0: i32) -> (i32, i32) {
    %c0_i32 = arith.constant 0 : i32
    %c0_i32_0 = arith.constant 0 : i32
    %c0_i32_1 = arith.constant 0 : i32
    return %c0_i32, %c0_i32_0 : i32, i32
  }
  func.func @transform_3(%arg0: i32) -> (i32, i32) {
    %c0_i32 = arith.constant 0 : i32
    %c0_i32_0 = arith.constant 0 : i32
    %c0_i32_1 = arith.constant 0 : i32
    return %c0_i32, %c0_i32_0 : i32, i32
  }
  func.func @transform_4(%arg0: i32) -> (i32, i32) {
    %c0_i32 = arith.constant 0 : i32
    %c0_i32_0 = arith.constant 0 : i32
    %c0_i32_1 = arith.constant 0 : i32
    return %c0_i32, %c0_i32_0 : i32, i32
  }
  func.func @transform_5(%arg0: i32) -> (i32, i32) {
    %c0_i32 = arith.constant 0 : i32
    %c0_i32_0 = arith.constant 0 : i32
    return %arg0, %c0_i32 : i32, i32
  }
  func.func @transform_6(%arg0: i32) -> (i32, i32) {
    %c0_i32 = arith.constant 0 : i32
    %c0_i32_0 = arith.constant 0 : i32
    return %arg0, %c0_i32 : i32, i32
  }
}

module attributes {stable_mosaic.version = 11 : i64} {
  func.func @_conv_res_kernel(%arg0: i32, %arg1: i32, %arg2: i32, %arg3: memref<64x1152xbf16, #tpu.memory_space<vmem>>, %arg4: memref<1152x128xbf16, #tpu.memory_space<vmem>>, %arg5: memref<1x128xf32, #tpu.memory_space<vmem>>, %arg6: memref<64x128xbf16, #tpu.memory_space<vmem>>, %arg7: memref<64x128xbf16, #tpu.memory_space<vmem>>, %arg8: memref<64x128xf32, #tpu.memory_space<vmem>>) attributes {dimension_semantics = [#tpu.dimension_semantics<parallel>, #tpu.dimension_semantics<parallel>, #tpu.dimension_semantics<arbitrary>], iteration_bounds = array<i64: 2, 1, 1>, scalar_prefetch = 0 : i64, scratch_operands = 1 : i64, tpu.core_type = #tpu.core_type<tc>, window_params = [{transform_indices = @transform_0, window_bounds = array<i64: 64, 1152>}, {transform_indices = @transform_1, window_bounds = array<i64: 1152, 128>}, {transform_indices = @transform_2, window_bounds = array<i64: 1, 128>}, {transform_indices = @transform_3, window_bounds = array<i64: 64, 128>}, {transform_indices = @transform_4, window_bounds = array<i64: 64, 128>}]} {
    %c0_i32 = arith.constant 0 : i32
    %0 = arith.cmpi eq, %arg2, %c0_i32 : i32
    %1 = arith.extui %0 : i1 to i32
    %c0_i32_0 = arith.constant 0 : i32
    %2 = arith.cmpi ne, %1, %c0_i32_0 : i32
    scf.if %2 {
      %cst_10 = arith.constant 0.000000e+00 : f32
      %12 = vector.broadcast %cst_10 : f32 to vector<64x128xf32>
      %c0_11 = arith.constant 0 : index
      %c0_12 = arith.constant 0 : index
      %13 = vector.load %arg8[%c0_11, %c0_12] : memref<64x128xf32, #tpu.memory_space<vmem>>, vector<64x128xf32>
      tpu.vector_store %arg8[%c0_11, %c0_12], %12 {strides = array<i32>} : memref<64x128xf32, #tpu.memory_space<vmem>>, vector<64x128xf32>,
    } else {
    }
    %c0 = arith.constant 0 : index
    %c0_1 = arith.constant 0 : index
    %3 = vector.load %arg8[%c0, %c0_1] : memref<64x128xf32, #tpu.memory_space<vmem>>, vector<64x128xf32>
    %c0_2 = arith.constant 0 : index
    %c0_3 = arith.constant 0 : index
    %4 = vector.load %arg3[%c0_2, %c0_3] : memref<64x1152xbf16, #tpu.memory_space<vmem>>, vector<64x1152xbf16>
    %c0_4 = arith.constant 0 : index
    %c0_5 = arith.constant 0 : index
    %5 = vector.load %arg4[%c0_4, %c0_5] : memref<1152x128xbf16, #tpu.memory_space<vmem>>, vector<1152x128xbf16>
    %cst = arith.constant dense<0.000000e+00> : vector<64x128xf32>
    %6 = tpu.matmul %4, %5, %cst {dimension_numbers = #tpu.dot_dimension_numbers<[1], [0], [0], [1], [0, 0, 1, 1], [], []>} : vector<64x1152xbf16>, vector<1152x128xbf16>, vector<64x128xf32> -> vector<64x128xf32>
    %7 = arith.addf %3, %6 : vector<64x128xf32>
    %c0_6 = arith.constant 0 : index
    %c0_7 = arith.constant 0 : index
    %8 = vector.load %arg8[%c0_6, %c0_7] : memref<64x128xf32, #tpu.memory_space<vmem>>, vector<64x128xf32>
    tpu.vector_store %arg8[%c0_6, %c0_7], %7 {strides = array<i32>} : memref<64x128xf32, #tpu.memory_space<vmem>>, vector<64x128xf32>,
    %c0_i32_8 = arith.constant 0 : i32
    %9 = arith.cmpi eq, %arg2, %c0_i32_8 : i32
    %10 = arith.extui %9 : i1 to i32
    %c0_i32_9 = arith.constant 0 : i32
    %11 = arith.cmpi ne, %10, %c0_i32_9 : i32
    scf.if %11 {
      %c0_10 = arith.constant 0 : index
      %c0_11 = arith.constant 0 : index
      %12 = vector.load %arg8[%c0_10, %c0_11] : memref<64x128xf32, #tpu.memory_space<vmem>>, vector<64x128xf32>
      %c0_12 = arith.constant 0 : index
      %c0_13 = arith.constant 0 : index
      %13 = vector.load %arg5[%c0_12, %c0_13] : memref<1x128xf32, #tpu.memory_space<vmem>>, vector<1x128xf32>
      %14 = vector.broadcast %13 : vector<1x128xf32> to vector<64x128xf32>
      %15 = arith.addf %12, %14 : vector<64x128xf32>
      %cst_14 = arith.constant 0.000000e+00 : f32
      %16 = vector.broadcast %cst_14 : f32 to vector<64x128xf32>
      %17 = arith.subf %16, %15 : vector<64x128xf32>
      %18 = math.exp %17 : vector<64x128xf32>
      %cst_15 = arith.constant 1.000000e+00 : f32
      %19 = vector.broadcast %cst_15 : f32 to vector<64x128xf32>
      %20 = arith.addf %19, %18 : vector<64x128xf32>
      %21 = tpu.reciprocal %20 {approx = true} : vector<64x128xf32> -> vector<64x128xf32>
      %22 = arith.mulf %15, %21 : vector<64x128xf32>
      %c0_16 = arith.constant 0 : index
      %c0_17 = arith.constant 0 : index
      %23 = vector.load %arg6[%c0_16, %c0_17] : memref<64x128xbf16, #tpu.memory_space<vmem>>, vector<64x128xbf16>
      %24 = arith.extf %23 : vector<64x128xbf16> to vector<64x128xf32>
      %25 = arith.addf %22, %24 : vector<64x128xf32>
      %26 = arith.truncf %25 : vector<64x128xf32> to vector<64x128xbf16>
      %c0_18 = arith.constant 0 : index
      %c0_19 = arith.constant 0 : index
      %27 = vector.load %arg7[%c0_18, %c0_19] : memref<64x128xbf16, #tpu.memory_space<vmem>>, vector<64x128xbf16>
      tpu.vector_store %arg7[%c0_18, %c0_19], %26 {strides = array<i32>} : memref<64x128xbf16, #tpu.memory_space<vmem>>, vector<64x128xbf16>,
    } else {
    }
    return
  }
  func.func @transform_0(%arg0: i32, %arg1: i32, %arg2: i32) -> (i32, i32) {
    %c0_i32 = arith.constant 0 : i32
    return %arg0, %arg2 : i32, i32
  }
  func.func @transform_1(%arg0: i32, %arg1: i32, %arg2: i32) -> (i32, i32) {
    %c0_i32 = arith.constant 0 : i32
    return %arg2, %arg1 : i32, i32
  }
  func.func @transform_2(%arg0: i32, %arg1: i32, %arg2: i32) -> (i32, i32) {
    %c0_i32 = arith.constant 0 : i32
    %c0_i32_0 = arith.constant 0 : i32
    return %c0_i32, %arg1 : i32, i32
  }
  func.func @transform_3(%arg0: i32, %arg1: i32, %arg2: i32) -> (i32, i32) {
    %c0_i32 = arith.constant 0 : i32
    return %arg0, %arg1 : i32, i32
  }
  func.func @transform_4(%arg0: i32, %arg1: i32, %arg2: i32) -> (i32, i32) {
    %c0_i32 = arith.constant 0 : i32
    return %arg0, %arg1 : i32, i32
  }
}

module attributes {stable_mosaic.version = 11 : i64} {
  func.func @_c3_tail_kernel(%arg0: i32, %arg1: memref<64x128xbf16, #tpu.memory_space<vmem>>, %arg2: memref<64x128xbf16, #tpu.memory_space<vmem>>, %arg3: memref<128x128xbf16, #tpu.memory_space<vmem>>, %arg4: memref<1x128xf32, #tpu.memory_space<vmem>>, %arg5: memref<128x128xbf16, #tpu.memory_space<vmem>>, %arg6: memref<128x128xbf16, #tpu.memory_space<vmem>>, %arg7: memref<1x128xf32, #tpu.memory_space<vmem>>, %arg8: memref<64x128xf32, #tpu.memory_space<vmem>>) attributes {dimension_semantics = [#tpu.dimension_semantics<parallel>], iteration_bounds = array<i64: 2>, scalar_prefetch = 0 : i64, scratch_operands = 0 : i64, tpu.core_type = #tpu.core_type<tc>, window_params = [{transform_indices = @transform_0, window_bounds = array<i64: 64, 128>}, {transform_indices = @transform_1, window_bounds = array<i64: 64, 128>}, {pipeline_mode = #tpu.pipeline_mode<synchronous>, transform_indices = @transform_2, window_bounds = array<i64: 128, 128>}, {pipeline_mode = #tpu.pipeline_mode<synchronous>, transform_indices = @transform_3, window_bounds = array<i64: 1, 128>}, {pipeline_mode = #tpu.pipeline_mode<synchronous>, transform_indices = @transform_4, window_bounds = array<i64: 128, 128>}, {pipeline_mode = #tpu.pipeline_mode<synchronous>, transform_indices = @transform_5, window_bounds = array<i64: 128, 128>}, {pipeline_mode = #tpu.pipeline_mode<synchronous>, transform_indices = @transform_6, window_bounds = array<i64: 1, 128>}, {transform_indices = @transform_7, window_bounds = array<i64: 64, 128>}]} {
    %c0 = arith.constant 0 : index
    %c0_0 = arith.constant 0 : index
    %0 = vector.load %arg1[%c0, %c0_0] : memref<64x128xbf16, #tpu.memory_space<vmem>>, vector<64x128xbf16>
    %c0_1 = arith.constant 0 : index
    %c0_2 = arith.constant 0 : index
    %1 = vector.load %arg3[%c0_1, %c0_2] : memref<128x128xbf16, #tpu.memory_space<vmem>>, vector<128x128xbf16>
    %cst = arith.constant dense<0.000000e+00> : vector<64x128xf32>
    %2 = tpu.matmul %0, %1, %cst {dimension_numbers = #tpu.dot_dimension_numbers<[1], [0], [0], [1], [0, 0, 1, 1], [], []>} : vector<64x128xbf16>, vector<128x128xbf16>, vector<64x128xf32> -> vector<64x128xf32>
    %c0_3 = arith.constant 0 : index
    %c0_4 = arith.constant 0 : index
    %3 = vector.load %arg4[%c0_3, %c0_4] : memref<1x128xf32, #tpu.memory_space<vmem>>, vector<1x128xf32>
    %4 = vector.broadcast %3 : vector<1x128xf32> to vector<64x128xf32>
    %5 = arith.addf %2, %4 : vector<64x128xf32>
    %cst_5 = arith.constant 0.000000e+00 : f32
    %6 = vector.broadcast %cst_5 : f32 to vector<64x128xf32>
    %7 = arith.subf %6, %5 : vector<64x128xf32>
    %8 = math.exp %7 : vector<64x128xf32>
    %cst_6 = arith.constant 1.000000e+00 : f32
    %9 = vector.broadcast %cst_6 : f32 to vector<64x128xf32>
    %10 = arith.addf %9, %8 : vector<64x128xf32>
    %11 = tpu.reciprocal %10 {approx = true} : vector<64x128xf32> -> vector<64x128xf32>
    %12 = arith.mulf %5, %11 : vector<64x128xf32>
    %13 = arith.truncf %12 : vector<64x128xf32> to vector<64x128xbf16>
    %c0_7 = arith.constant 0 : index
    %c0_8 = arith.constant 0 : index
    %14 = vector.load %arg2[%c0_7, %c0_8] : memref<64x128xbf16, #tpu.memory_space<vmem>>, vector<64x128xbf16>
    %c0_9 = arith.constant 0 : index
    %c0_10 = arith.constant 0 : index
    %15 = vector.load %arg5[%c0_9, %c0_10] : memref<128x128xbf16, #tpu.memory_space<vmem>>, vector<128x128xbf16>
    %cst_11 = arith.constant dense<0.000000e+00> : vector<64x128xf32>
    %16 = tpu.matmul %14, %15, %cst_11 {dimension_numbers = #tpu.dot_dimension_numbers<[1], [0], [0], [1], [0, 0, 1, 1], [], []>} : vector<64x128xbf16>, vector<128x128xbf16>, vector<64x128xf32> -> vector<64x128xf32>
    %c0_12 = arith.constant 0 : index
    %c0_13 = arith.constant 0 : index
    %17 = vector.load %arg6[%c0_12, %c0_13] : memref<128x128xbf16, #tpu.memory_space<vmem>>, vector<128x128xbf16>
    %cst_14 = arith.constant dense<0.000000e+00> : vector<64x128xf32>
    %18 = tpu.matmul %13, %17, %cst_14 {dimension_numbers = #tpu.dot_dimension_numbers<[1], [0], [0], [1], [0, 0, 1, 1], [], []>} : vector<64x128xbf16>, vector<128x128xbf16>, vector<64x128xf32> -> vector<64x128xf32>
    %19 = arith.addf %16, %18 : vector<64x128xf32>
    %c0_15 = arith.constant 0 : index
    %c0_16 = arith.constant 0 : index
    %20 = vector.load %arg7[%c0_15, %c0_16] : memref<1x128xf32, #tpu.memory_space<vmem>>, vector<1x128xf32>
    %21 = vector.broadcast %20 : vector<1x128xf32> to vector<64x128xf32>
    %22 = arith.addf %19, %21 : vector<64x128xf32>
    %cst_17 = arith.constant 0.000000e+00 : f32
    %23 = vector.broadcast %cst_17 : f32 to vector<64x128xf32>
    %24 = arith.subf %23, %22 : vector<64x128xf32>
    %25 = math.exp %24 : vector<64x128xf32>
    %cst_18 = arith.constant 1.000000e+00 : f32
    %26 = vector.broadcast %cst_18 : f32 to vector<64x128xf32>
    %27 = arith.addf %26, %25 : vector<64x128xf32>
    %28 = tpu.reciprocal %27 {approx = true} : vector<64x128xf32> -> vector<64x128xf32>
    %29 = arith.mulf %22, %28 : vector<64x128xf32>
    %c0_19 = arith.constant 0 : index
    %c0_20 = arith.constant 0 : index
    %30 = vector.load %arg8[%c0_19, %c0_20] : memref<64x128xf32, #tpu.memory_space<vmem>>, vector<64x128xf32>
    tpu.vector_store %arg8[%c0_19, %c0_20], %29 {strides = array<i32>} : memref<64x128xf32, #tpu.memory_space<vmem>>, vector<64x128xf32>,
    return
  }
  func.func @transform_0(%arg0: i32) -> (i32, i32) {
    %c0_i32 = arith.constant 0 : i32
    %c0_i32_0 = arith.constant 0 : i32
    return %arg0, %c0_i32 : i32, i32
  }
  func.func @transform_1(%arg0: i32) -> (i32, i32) {
    %c0_i32 = arith.constant 0 : i32
    %c0_i32_0 = arith.constant 0 : i32
    return %arg0, %c0_i32 : i32, i32
  }
  func.func @transform_2(%arg0: i32) -> (i32, i32) {
    %c0_i32 = arith.constant 0 : i32
    %c0_i32_0 = arith.constant 0 : i32
    %c0_i32_1 = arith.constant 0 : i32
    return %c0_i32, %c0_i32_0 : i32, i32
  }
  func.func @transform_3(%arg0: i32) -> (i32, i32) {
    %c0_i32 = arith.constant 0 : i32
    %c0_i32_0 = arith.constant 0 : i32
    %c0_i32_1 = arith.constant 0 : i32
    return %c0_i32, %c0_i32_0 : i32, i32
  }
  func.func @transform_4(%arg0: i32) -> (i32, i32) {
    %c0_i32 = arith.constant 0 : i32
    %c0_i32_0 = arith.constant 0 : i32
    %c0_i32_1 = arith.constant 0 : i32
    return %c0_i32, %c0_i32_0 : i32, i32
  }
  func.func @transform_5(%arg0: i32) -> (i32, i32) {
    %c0_i32 = arith.constant 0 : i32
    %c0_i32_0 = arith.constant 0 : i32
    %c0_i32_1 = arith.constant 0 : i32
    return %c0_i32, %c0_i32_0 : i32, i32
  }
  func.func @transform_6(%arg0: i32) -> (i32, i32) {
    %c0_i32 = arith.constant 0 : i32
    %c0_i32_0 = arith.constant 0 : i32
    %c0_i32_1 = arith.constant 0 : i32
    return %c0_i32, %c0_i32_0 : i32, i32
  }
  func.func @transform_7(%arg0: i32) -> (i32, i32) {
    %c0_i32 = arith.constant 0 : i32
    %c0_i32_0 = arith.constant 0 : i32
    return %arg0, %c0_i32 : i32, i32
  }
}

</mosaic_0001>

<bundles_post_ra>
// kernel: stage_forward.4
= control target key start
LH: loop header
LB: loop body
LE: loop exit
PB: predicated region body
PF: predicated region fallthrough
CT: control target
= control target key end

     0   :  { %s851_s12 = smov 0   ;;  %s853_s13 = smov 0   ;;  %s923_s0 = inlined_call_operand.vmem [shape: bf16[128,36], index: 0, kind: input, shape index: {}]   ;;  %s924_s1 = inlined_call_operand.vmem [shape: bf16[36,128], index: 1, kind: input, shape index: {}]   ;;  %s925_s2 = inlined_call_operand.vmem [shape: f32[1,128], index: 2, kind: input, shape index: {}]   ;;  %s926_s3 = inlined_call_operand.vmem [shape: bf16[128,128], index: 3, kind: output, shape index: {}]  }
   0x1   :  { %s855_s14 = smov 0  }
   0x2 LB: > { %s32_s15 = sadd.s32 1, %s825_s13  ;;  %p657_p0 = scmp.ge.s32.totalorder %s829_s14, 1  ;;  %s829_s14 = sphi %s855_s14, %s13_s14   ;;  %s825_s13 = sphi %s853_s13, %s928_s13   ;;  %s821_s12 = sphi %s851_s12, %s927_s12  }
   0x3   : > { %p34_p1 = scmp.ge.s32.totalorder %s32_s15, 2  ;;  %p188_p2 = scmp.lt.s32.totalorder %s829_s14, 3 }
   0x5   : > { %s930_s15 = smov (%p34_p1, %s32_s15), 0  ;;  %p189_p3 = pnand %p657_p0, %p188_p2 }
   0x6   : > { %v768_v0 = vld [vmem:[%s924_s1] sm:$0xff] (!%p189_p3)   ;;  %v769_v1 = vld [vmem:[%s924_s1 + $0x8] sm:$0xff] (!%p189_p3)   ;;  %s658_s20 = sshll.u32 (!%p189_p3), %s821_s12, 3  ;;  %v770_v2 = vld [vmem:[%s924_s1 + $0x10] ss:$0 sps:$4 sm:$0x33] (!%p189_p3)  }
   0x7   : > { %192 = sbr.rel (%p189_p3) target bundleno = 273 (0x111), region = 32  ;;  %722 = vmatprep.subr.bf16.mxu0 (!%p189_p3), %v768_v0  ;;  %736 = vmatprep.subr.bf16.mxu1 (!%p189_p3), %v768_v0  ;;  %p230_p4 = scmp.lt.s32.totalorder (!%p189_p3), %s658_s20, 15  ;;  %vm341_vm0 = vcmask (!%p189_p3), 1041408   ;;  %vm328_vm1 = vcmask (!%p189_p3), 293888   ;;  %v673_v8 = vld [vmem:[%s925_s2] ss:$0 sm:$0xff] (!%p189_p3) }
   0x8   : > { %723 = vmatpush3.bf16.msra.mxu0 (!%p189_p3), %v768_v0  ;;  %739 = vmatpush3.bf16.msra.mxu1 (!%p189_p3), %v768_v0  ;;  %v343_v3 = vsel (!%p189_p3), %vm341_vm0, %v770_v2, 0 }
   0x9   : > { %724 = vmatprep.subr.bf16.mxu0 (!%p189_p3), %v769_v1  ;;  %737 = vmatprep.subr.bf16.mxu1 (!%p189_p3), %v769_v1 }
   0xc   : > { %725 = vmatpush3.bf16.msra.mxu0 (!%p189_p3), %v769_v1  ;;  %740 = vmatpush3.bf16.msra.mxu1 (!%p189_p3), %v769_v1 }
   0xd   : > { %742 = vmatprep.subr.msk.bf16.mxu0 (!%p189_p3), %vm341_vm0, %v770_v2  ;;  %743 = vmatprep.subr.msk.bf16.mxu1 (!%p189_p3), %vm341_vm0, %v770_v2 }
   0xe   : > { %s932_s20 = smov (!%p230_p4, %s658_s20), 15 }
   0xf   : > { %s659_s23 = sshll.u32 %s932_s20, 2 }
  0x10   : > { %s236_s26 = scalar_lea.vmem %s923_s0, %s659_s23  ;;  %727 = vmatpush3.bf16.msra.mxu0 %v343_v3  ;;  %741 = vmatpush3.bf16.msra.mxu1 %v343_v3  ;;  %s257_s4 = scalar_lea.vmem %s926_s3, %s659_s23 }
  0x11   : > { %v771_v4 = vld [vmem:[%s236_s26] sm:$0xff]   ;;  %v772_v5 = vld [vmem:[%s236_s26 + $0x10] sm:$0xff]   ;;  %v773_v6 = vld [vmem:[%s236_s26 + $0x8] sm:$0xff]  }
  0x12   : > { %728 = vmatprep.mubr.msk.bf16.mxu0 %vm328_vm1, %v771_v4  ;;  %v774_v7 = vld [vmem:[%s236_s26 + $0x18] sm:$0xff]   ;;  %732 = vmatprep.mubr.msk.bf16.mxu1 %vm328_vm1, %v772_v5 }
  0x13   : > { %729 = vmatmul.mubr.msk.bf16.vlgmr.msra.gmra.mrb[0].mxu0 %vm328_vm1, %v773_v6  ;;  %733 = vmatmul.mubr.msk.bf16.vlgmr.msra.gmra.mrb[0].mxu1 %vm328_vm1, %v774_v7 }
  0xe6   : > { %v730_v9 = vpop.f32.mrb[0].mxu0  ;;  %v734_v10 = vpop.f32.mrb[0].mxu1 }
  0xe7   : > { %v889_v11 = vadd.f32 %v730_v9, %v673_v8  ;;  %v891_v12 = vadd.f32 %v734_v10, %v673_v8  ;;  %v379_v13 = vpop.f32.mrb[1].mxu0  ;;  %v395_v14 = vpop.f32.mrb[1].mxu1 }
  0xe8   : > { %v893_v15 = vadd.f32 %v673_v8, %v379_v13  ;;  %v895_v16 = vadd.f32 %v673_v8, %v395_v14  ;;  %v731_v17 = vpop.f32.mrb[2].mxu0  ;;  %v735_v18 = vpop.f32.mrb[2].mxu1 }
  0xe9   : > { %v454_v19 = vsub.f32 0.0, %v889_v11  ;;  %v458_v20 = vsub.f32 0.0, %v891_v12  ;;  %v447_v21 = vadd.f32 %v731_v17, %v673_v8  ;;  %v451_v22 = vadd.f32 %v735_v18, %v673_v8  ;;  %v382_v23 = vpop.f32.mrb[3].mxu0  ;;  %v398_v24 = vpop.f32.mrb[3].mxu1 }
  0xea   : > { %v452_v25 = vsub.f32 0.0, %v893_v15  ;;  %v456_v26 = vsub.f32 0.0, %v895_v16  ;;  %v445_v27 = vadd.f32 %v673_v8, %v382_v23  ;;  %v901_v28 = vadd.f32 %v673_v8, %v398_v24 }
  0xeb   : > { %v464_v29 = vmul.f32 1.442695, %v454_v19  ;;  %v472_v30 = vmul.f32 1.442695, %v458_v20  ;;  %v455_v31 = vsub.f32 0.0, %v447_v21  ;;  %v459_v32 = vsub.f32 0.0, %v451_v22 }
  0xec   : > { %v460_v33 = vmul.f32 1.442695, %v452_v25  ;;  %v468_v34 = vmul.f32 1.442695, %v456_v26  ;;  %v453_v35 = vsub.f32 0.0, %v445_v27  ;;  %v457_v36 = vsub.f32 0.0, %v901_v28 }
  0xed   : > { %775 = vpow2.f32 %v464_v29  ;;  %v466_v37 = vmul.f32 1.442695, %v455_v31  ;;  %v474_v38 = vmul.f32 1.442695, %v459_v32 }
  0xee   : > { %777 = vpow2.f32 %v472_v30  ;;  %v462_v39 = vmul.f32 1.442695, %v453_v35  ;;  %v470_v40 = vmul.f32 1.442695, %v457_v36 }
  0xef   : > { %779 = vpow2.f32 %v460_v33 }
  0xf0   : > { %781 = vpow2.f32 %v468_v34 }
  0xf1   : > { %783 = vpow2.f32 %v466_v37 }
  0xf2   : > { %785 = vpow2.f32 %v474_v38 }
  0xf3   : > { %787 = vpow2.f32 %v462_v39 }
  0xf4   : > { %789 = vpow2.f32 %v470_v40 }
  0xf7   : > { %v776_v41 = vpop.eup %775 }
  0xf8   : > { %v778_v42 = vpop.eup %777  ;;  %v478_v43 = vadd.f32 1.0, %v776_v41 }
  0xf9   : > { %v780_v44 = vpop.eup %779  ;;  %v482_v45 = vadd.f32 1.0, %v778_v42 }
  0xfa   : > { %v782_v46 = vpop.eup %781  ;;  %791 = vrcp.f32 %v478_v43  ;;  %v476_v47 = vadd.f32 1.0, %v780_v44 }
  0xfb   : > { %v784_v48 = vpop.eup %783  ;;  %793 = vrcp.f32 %v482_v45  ;;  %v480_v49 = vadd.f32 1.0, %v782_v46 }
  0xfc   : > { %v786_v50 = vpop.eup %785  ;;  %795 = vrcp.f32 %v476_v47  ;;  %v479_v51 = vadd.f32 1.0, %v784_v48 }
  0xfd   : > { %v788_v52 = vpop.eup %787  ;;  %797 = vrcp.f32 %v480_v49  ;;  %v483_v53 = vadd.f32 1.0, %v786_v50 }
  0xfe   : > { %v790_v54 = vpop.eup %789  ;;  %799 = vrcp.f32 %v479_v51  ;;  %v477_v55 = vadd.f32 1.0, %v788_v52 }
  0xff   : > { %801 = vrcp.f32 %v483_v53  ;;  %v481_v56 = vadd.f32 1.0, %v790_v54 }
 0x100   : > { %803 = vrcp.f32 %v477_v55 }
 0x101   : > { %805 = vrcp.f32 %v481_v56 }
 0x104   : > { %v792_v57 = vpop.eup %791 }
 0x105   : > { %v794_v58 = vpop.eup %793  ;;  %v494_v63 = vmul.f32 %v792_v57, %v889_v11 }
 0x106   : > { %v796_v59 = vpop.eup %795  ;;  %v498_v2 = vmul.f32 %v794_v58, %v891_v12 }
 0x107   : > { %v798_v60 = vpop.eup %797  ;;  %v492_v5 = vmul.f32 %v796_v59, %v893_v15 }
 0x108   : > { %v800_v61 = vpop.eup %799  ;;  %v496_v8 = vmul.f32 %v798_v60, %v895_v16 }
 0x109   : > { %v802_v62 = vpop.eup %801  ;;  %v495_v0 = vmul.f32 %v800_v61, %v447_v21 }
 0x10a   : > { %v804_v1 = vpop.eup %803  ;;  %v499_v3 = vmul.f32 %v802_v62, %v451_v22 }
 0x10b   : > { %v806_v4 = vpop.eup %805  ;;  %v700_v6 = vpack.c.bf16 %v495_v0, %v494_v63  ;;  %v493_v7 = vmul.f32 %v804_v1, %v445_v27 }
 0x10c   : > { %v710_v9 = vpack.c.bf16 %v499_v3, %v498_v2  ;;  %v497_v10 = vmul.f32 %v806_v4, %v901_v28 }
 0x10d   : > { %712 = vst [vmem:[%s257_s4 + $0x8] sm:$0xff] %v700_v6   ;;  %v695_v11 = vpack.c.bf16 %v493_v7, %v492_v5 }
 0x10e   : > { %714 = vst [vmem:[%s257_s4 + $0x18] sm:$0xff] %v710_v9   ;;  %v705_v12 = vpack.c.bf16 %v497_v10, %v496_v8 }
 0x10f   : > { %696 = vst [vmem:[%s257_s4] sm:$0xff] %v695_v11  }
 0x110   : > { %713 = vst [vmem:[%s257_s4 + $0x10] sm:$0xff] %v705_v12  }
 0x111 PF: > { %s13_s14 = sadd.s32 1, %s829_s14   ;;  %s927_s12 = smov %s825_s13 }
 0x112   : > { %p10_p5 = scmp.ge.s32.totalorder %s13_s14, 4   ;;  %s928_s13 = smov %s930_s15 }
 0x114   :  { %12 = sbr.rel (!%p10_p5) target bundleno = 2 (0x2), region = 76 }

// kernel: stage_forward.5
= control target key start
LH: loop header
LB: loop body
LE: loop exit
PB: predicated region body
PF: predicated region fallthrough
CT: control target
= control target key end

     0   :  { %s1160_s21 = smov 0   ;;  %s1271_s0 = inlined_call_operand.vmem [shape: bf16[128,128], index: 0, kind: input, shape index: {}]   ;;  %s1272_s1 = inlined_call_operand.vmem [shape: bf16[128,128], index: 1, kind: input, shape index: {}]   ;;  %s1273_s2 = inlined_call_operand.vmem [shape: f32[1,128], index: 2, kind: input, shape index: {}]   ;;  %s1274_s3 = inlined_call_operand.vmem [shape: bf16[128,128], index: 3, kind: input, shape index: {}]   ;;  %s1275_s4 = inlined_call_operand.vmem [shape: f32[1,128], index: 4, kind: input, shape index: {}]   ;;  %s1276_s5 = inlined_call_operand.vmem [shape: bf16[128,128], index: 5, kind: output, shape index: {0}]   ;;  %s1277_s6 = inlined_call_operand.vmem [shape: bf16[128,128], index: 6, kind: output, shape index: {1}]  }
   0x1 LB: > { %s840_s22 = sadd.s32 4294967295, %s1123_s21   ;;  %p844_p0 = scmp.ge.s32.totalorder %s1123_s21, 1  ;;  %s1123_s21 = sphi %s1160_s21, %s17_s21  }
   0x2   : > { %p216_p1 = scmp.lt.s32.totalorder %s1123_s21, 3 }
   0x4   : > { %p217_p2 = pnand %p844_p0, %p216_p1 }
   0x5   : > { %v1033_v0 = vld [vmem:[%s1272_s1] sm:$0xff] (!%p217_p2)   ;;  %s845_s25 = sshll.u32 (!%p217_p2), %s840_s22, 3  ;;  %v1034_v1 = vld [vmem:[%s1272_s1 + $0x8] sm:$0xff] (!%p217_p2)   ;;  %v1035_v2 = vld [vmem:[%s1272_s1 + $0x10] sm:$0xff] (!%p217_p2)  }
   0x6   : > { %220 = sbr.rel (%p217_p2) target bundleno = 546 (0x222), region = 40  ;;  %p252_p3 = scmp.lt.s32.totalorder (!%p217_p2), %s845_s25, 15  ;;  %977 = vmatprep.subr.bf16.mxu0 (!%p217_p2), %v1033_v0  ;;  %v1036_v3 = vld [vmem:[%s1272_s1 + $0x18] sm:$0xff] (!%p217_p2)   ;;  %v1037_v5 = vld [vmem:[%s1272_s1 + $0x20] sm:$0xff] (!%p217_p2)   ;;  %v1038_v6 = vld [vmem:[%s1272_s1 + $0x28] sm:$0xff] (!%p217_p2)  }
   0x7   : > { %978 = vmatpush3.bf16.msra.mxu0 (!%p217_p2), %v1033_v0  ;;  %v1039_v7 = vld [vmem:[%s1272_s1 + $0x30] sm:$0xff] (!%p217_p2)   ;;  %v1040_v8 = vld [vmem:[%s1272_s1 + $0x38] sm:$0xff] (!%p217_p2)   ;;  %v1045_v12 = vld [vmem:[%s1274_s3] sm:$0xff] (!%p217_p2)  }
   0x8   : > { %979 = vmatprep.subr.bf16.mxu0 (!%p217_p2), %v1034_v1  ;;  %1001 = vmatprep.subr.bf16.mxu1 (!%p217_p2), %v1045_v12  ;;  %v1046_v13 = vld [vmem:[%s1274_s3 + $0x8] sm:$0xff] (!%p217_p2)   ;;  %v1047_v14 = vld [vmem:[%s1274_s3 + $0x10] sm:$0xff] (!%p217_p2)   ;;  %v1048_v15 = vld [vmem:[%s1274_s3 + $0x18] sm:$0xff] (!%p217_p2)  }
   0x9   : > { %1002 = vmatpush3.bf16.msra.mxu1 (!%p217_p2), %v1045_v12  ;;  %v1049_v16 = vld [vmem:[%s1274_s3 + $0x20] sm:$0xff] (!%p217_p2)   ;;  %v1050_v17 = vld [vmem:[%s1274_s3 + $0x28] sm:$0xff] (!%p217_p2)   ;;  %v1051_v18 = vld [vmem:[%s1274_s3 + $0x30] sm:$0xff] (!%p217_p2)  }
   0xa   : > { %1003 = vmatprep.subr.bf16.mxu1 (!%p217_p2), %v1046_v13  ;;  %v1052_v19 = vld [vmem:[%s1274_s3 + $0x38] sm:$0xff] (!%p217_p2)   ;;  %v851_v20 = vld [vmem:[%s1273_s2] ss:$0 sm:$0xff] (!%p217_p2) }
   0xb   : > { %980 = vmatpush3.bf16.msra.mxu0 (!%p217_p2), %v1034_v1 }
   0xc   : > { %981 = vmatprep.subr.bf16.mxu0 (!%p217_p2), %v1035_v2 }
   0xd   : > { %s1279_s25 = smov (!%p252_p3, %s845_s25), 15  ;;  %1004 = vmatpush3.bf16.msra.mxu1 %v1046_v13 }
   0xe   : > { %s1177_s30 = sshll.u32 %s1279_s25, 2  ;;  %1005 = vmatprep.subr.bf16.mxu1 %v1047_v14 }
   0xf   : > { %s255_s9 = scalar_lea.vmem %s1271_s0, %s1177_s30  ;;  %982 = vmatpush3.bf16.msra.mxu0 %v1035_v2  ;;  %s261_s18 = scalar_lea.vmem %s1276_s5, %s1177_s30 }
  0x10   : > { %v1041_v4 = vld [vmem:[%s255_s9] sm:$0xff]   ;;  %983 = vmatprep.subr.bf16.mxu0 %v1036_v3  ;;  %v1042_v9 = vld [vmem:[%s255_s9 + $0x8] sm:$0xff]   ;;  %v1043_v10 = vld [vmem:[%s255_s9 + $0x10] sm:$0xff]   ;;  %s267_s24 = scalar_lea.vmem %s1277_s6, %s1177_s30 }
  0x11   : > { %993 = vmatprep.mubr.bf16.mxu0 %v1041_v4  ;;  %v1044_v11 = vld [vmem:[%s255_s9 + $0x18] sm:$0xff]   ;;  %1006 = vmatpush3.bf16.msra.mxu1 %v1047_v14 }
  0x12   : > { %1007 = vmatprep.subr.bf16.mxu1 %v1048_v15 }
  0x13   : > { %984 = vmatpush3.bf16.msra.mxu0 %v1036_v3 }
  0x14   : > { %985 = vmatprep.subr.bf16.mxu0 %v1037_v5 }
  0x15   : > { %1008 = vmatpush3.bf16.msra.mxu1 %v1048_v15 }
  0x16   : > { %1009 = vmatprep.subr.bf16.mxu1 %v1049_v16 }
  0x17   : > { %986 = vmatpush3.bf16.msra.mxu0 %v1037_v5 }
  0x18   : > { %987 = vmatprep.subr.bf16.mxu0 %v1038_v6 }
  0x19   : > { %1010 = vmatpush3.bf16.msra.mxu1 %v1049_v16 }
  0x1a   : > { %1011 = vmatprep.subr.bf16.mxu1 %v1050_v17 }
  0x1b   : > { %988 = vmatpush3.bf16.msra.mxu0 %v1038_v6 }
  0x1c   : > { %989 = vmatprep.subr.bf16.mxu0 %v1039_v7 }
  0x1d   : > { %1012 = vmatpush3.bf16.msra.mxu1 %v1050_v17 }
  0x1e   : > { %1013 = vmatprep.subr.bf16.mxu1 %v1051_v18 }
  0x1f   : > { %990 = vmatpush3.bf16.msra.mxu0 %v1039_v7 }
  0x20   : > { %991 = vmatprep.subr.bf16.mxu0 %v1040_v8 }
  0x21   : > { %1014 = vmatpush3.bf16.msra.mxu1 %v1051_v18 }
  0x22   : > { %1015 = vmatprep.subr.bf16.mxu1 %v1052_v19 }
  0x23   : > { %992 = vmatpush3.bf16.msra.mxu0 %v1040_v8 }
  0x25   : > { %1016 = vmatpush3.bf16.msra.mxu1 %v1052_v19 }
  0x26   : > { %994 = vmatmul.mubr.bf16.vlgmr.msra.gmra.mrb[0].mxu0 %v1042_v9 }
  0x27   : > { %997 = vmatprep.mubr.bf16.mxu0 %v1043_v10 }
  0x2e   : > { %998 = vmatmul.mubr.bf16.gmra.mrb[4].mxu0 %v1044_v11 }
  0xf9   : > { %v995_v21 = vpop.f32.mrb[0].mxu0 }
  0xfa   : > { %v1225_v22 = vadd.f32 %v995_v21, %v851_v20  ;;  %v407_v23 = vpop.f32.mrb[1].mxu0 }
  0xfb   : > { %v1227_v24 = vadd.f32 %v851_v20, %v407_v23  ;;  %v996_v25 = vpop.f32.mrb[2].mxu0 }
  0xfc   : > { %v440_v26 = vsub.f32 0.0, %v1225_v22  ;;  %v1230_v27 = vadd.f32 %v996_v25, %v851_v20  ;;  %v410_v28 = vpop.f32.mrb[3].mxu0  ;;  %v872_v25 = vld [vmem:[%s1275_s4] ss:$0 sm:$0xff] }
  0xfd   : > { %v438_v29 = vsub.f32 0.0, %v1227_v24  ;;  %v411_v30 = vadd.f32 %v851_v20, %v410_v28 }
  0xfe   : > { %v450_v31 = vmul.f32 1.442695, %v440_v26  ;;  %v441_v32 = vsub.f32 0.0, %v1230_v27 }
  0xff   : > { %v446_v33 = vmul.f32 1.442695, %v438_v29  ;;  %v439_v34 = vsub.f32 0.0, %v411_v30 }
 0x100   : > { %1053 = vpow2.f32 %v450_v31  ;;  %v452_v35 = vmul.f32 1.442695, %v441_v32 }
 0x101   : > { %1055 = vpow2.f32 %v446_v33  ;;  %v448_v36 = vmul.f32 1.442695, %v439_v34  ;;  %v999_v37 = vpop.f32.mrb[4].mxu0 }
 0x102   : > { %1057 = vpow2.f32 %v452_v35  ;;  %v1234_v38 = vadd.f32 %v999_v37, %v851_v20  ;;  %v423_v39 = vpop.f32.mrb[5].mxu0 }
 0x103   : > { %1059 = vpow2.f32 %v448_v36  ;;  %v424_v40 = vadd.f32 %v851_v20, %v423_v39  ;;  %v1000_v41 = vpop.f32.mrb[6].mxu0 }
 0x104   : > { %v444_v42 = vsub.f32 0.0, %v1234_v38  ;;  %v435_v43 = vadd.f32 %v1000_v41, %v851_v20  ;;  %v426_v44 = vpop.f32.mrb[7].mxu0 }
 0x105   : > { %v442_v45 = vsub.f32 0.0, %v424_v40  ;;  %v427_v46 = vadd.f32 %v851_v20, %v426_v44 }
 0x106   : > { %v458_v47 = vmul.f32 1.442695, %v444_v42  ;;  %v445_v48 = vsub.f32 0.0, %v435_v43 }
 0x107   : > { %v454_v49 = vmul.f32 1.442695, %v442_v45  ;;  %v443_v50 = vsub.f32 0.0, %v427_v46 }
 0x108   : > { %1061 = vpow2.f32 %v458_v47  ;;  %v460_v51 = vmul.f32 1.442695, %v445_v48 }
 0x109   : > { %1063 = vpow2.f32 %v454_v49  ;;  %v456_v52 = vmul.f32 1.442695, %v443_v50 }
 0x10a   : > { %v1054_v53 = vpop.eup %1053  ;;  %1065 = vpow2.f32 %v460_v51 }
 0x10b   : > { %v1056_v54 = vpop.eup %1055  ;;  %v464_v55 = vadd.f32 1.0, %v1054_v53  ;;  %1067 = vpow2.f32 %v456_v52 }
 0x10c   : > { %v1058_v56 = vpop.eup %1057  ;;  %v462_v57 = vadd.f32 1.0, %v1056_v54 }
 0x10d   : > { %v1060_v58 = vpop.eup %1059  ;;  %1069 = vrcp.f32 %v464_v55  ;;  %v465_v59 = vadd.f32 1.0, %v1058_v56 }
 0x10e   : > { %1071 = vrcp.f32 %v462_v57  ;;  %v463_v60 = vadd.f32 1.0, %v1060_v58 }
 0x10f   : > { %1073 = vrcp.f32 %v465_v59 }
 0x110   : > { %1075 = vrcp.f32 %v463_v60 }
 0x112   : > { %v1062_v61 = vpop.eup %1061 }
 0x113   : > { %v1064_v62 = vpop.eup %1063  ;;  %v468_v63 = vadd.f32 1.0, %v1062_v61 }
 0x114   : > { %v1066_v0 = vpop.eup %1065  ;;  %v466_v1 = vadd.f32 1.0, %v1064_v62 }
 0x115   : > { %v1068_v2 = vpop.eup %1067  ;;  %1077 = vrcp.f32 %v468_v63  ;;  %v469_v3 = vadd.f32 1.0, %v1066_v0 }
 0x116   : > { %1079 = vrcp.f32 %v466_v1  ;;  %v467_v4 = vadd.f32 1.0, %v1068_v2 }
 0x117   : > { %v1070_v5 = vpop.eup %1069  ;;  %1081 = vrcp.f32 %v469_v3 }
 0x118   : > { %v1072_v6 = vpop.eup %1071  ;;  %1083 = vrcp.f32 %v467_v4  ;;  %v480_v9 = vmul.f32 %v1070_v5, %v1225_v22 }
 0x119   : > { %v1074_v7 = vpop.eup %1073  ;;  %v478_v11 = vmul.f32 %v1072_v6, %v1227_v24 }
 0x11a   : > { %v1076_v8 = vpop.eup %1075  ;;  %v481_v10 = vmul.f32 %v1074_v7, %v1230_v27 }
 0x11b   : > { %v479_v12 = vmul.f32 %v1076_v8, %v411_v30 }
 0x11c   : > { %v487_v13 = vpack.c.bf16 %v481_v10, %v480_v9 }
 0x11d   : > { %v486_v14 = vpack.c.bf16 %v479_v12, %v478_v11 }
 0x11e   : > { %947 = vst [vmem:[%s261_s18 + $0x8] sm:$0xff] %v487_v13  }
 0x11f   : > { %v1078_v15 = vpop.eup %1077  ;;  %911 = vst [vmem:[%s261_s18] sm:$0xff] %v486_v14   ;;  %1017 = vmatprep.mubr.bf16.mxu1 %v486_v14 }
 0x120   : > { %v1080_v16 = vpop.eup %1079  ;;  %1018 = vmatmul.mubr.bf16.vlgmr.msra.gmra.mrb[0].mxu1 %v487_v13  ;;  %v484_v19 = vmul.f32 %v1078_v15, %v1234_v38 }
 0x121   : > { %v1082_v17 = vpop.eup %1081  ;;  %v482_v21 = vmul.f32 %v1080_v16, %v424_v40 }
 0x122   : > { %v1084_v18 = vpop.eup %1083  ;;  %v485_v20 = vmul.f32 %v1082_v17, %v435_v43 }
 0x123   : > { %v483_v22 = vmul.f32 %v1084_v18, %v427_v46 }
 0x124   : > { %v489_v23 = vpack.c.bf16 %v485_v20, %v484_v19 }
 0x125   : > { %v488_v24 = vpack.c.bf16 %v483_v22, %v482_v21 }
 0x126   : > { %949 = vst [vmem:[%s261_s18 + $0x18] sm:$0xff] %v489_v23  }
 0x127   : > { %948 = vst [vmem:[%s261_s18 + $0x10] sm:$0xff] %v488_v24   ;;  %1021 = vmatprep.mubr.bf16.mxu1 %v488_v24 }
 0x128   : > { %1022 = vmatmul.mubr.bf16.gmra.mrb[4].mxu1 %v489_v23 }
 0x1f3   : > { %v1019_v26 = vpop.f32.mrb[0].mxu1 }
 0x1f4   : > { %v1248_v27 = vadd.f32 %v1019_v26, %v872_v25  ;;  %v631_v28 = vpop.f32.mrb[1].mxu1 }
 0x1f5   : > { %v1250_v29 = vadd.f32 %v872_v25, %v631_v28  ;;  %v1020_v30 = vpop.f32.mrb[2].mxu1 }
 0x1f6   : > { %v664_v31 = vsub.f32 0.0, %v1248_v27  ;;  %v1253_v32 = vadd.f32 %v1020_v30, %v872_v25  ;;  %v634_v33 = vpop.f32.mrb[3].mxu1 }
 0x1f7   : > { %v662_v34 = vsub.f32 0.0, %v1250_v29  ;;  %v1256_v35 = vadd.f32 %v872_v25, %v634_v33 }
 0x1f8   : > { %v674_v36 = vmul.f32 1.442695, %v664_v31  ;;  %v665_v37 = vsub.f32 0.0, %v1253_v32 }
 0x1f9   : > { %v670_v38 = vmul.f32 1.442695, %v662_v34  ;;  %v663_v39 = vsub.f32 0.0, %v1256_v35 }
 0x1fa   : > { %1085 = vpow2.f32 %v674_v36  ;;  %v676_v40 = vmul.f32 1.442695, %v665_v37 }
 0x1fb   : > { %1087 = vpow2.f32 %v670_v38  ;;  %v672_v41 = vmul.f32 1.442695, %v663_v39  ;;  %v1023_v42 = vpop.f32.mrb[4].mxu1 }
 0x1fc   : > { %1089 = vpow2.f32 %v676_v40  ;;  %v656_v43 = vadd.f32 %v1023_v42, %v872_v25  ;;  %v647_v44 = vpop.f32.mrb[5].mxu1 }
 0x1fd   : > { %1091 = vpow2.f32 %v672_v41  ;;  %v648_v45 = vadd.f32 %v872_v25, %v647_v44  ;;  %v1024_v46 = vpop.f32.mrb[6].mxu1 }
 0x1fe   : > { %v668_v47 = vsub.f32 0.0, %v656_v43  ;;  %v659_v48 = vadd.f32 %v1024_v46, %v872_v25  ;;  %v650_v49 = vpop.f32.mrb[7].mxu1 }
 0x1ff   : > { %v666_v50 = vsub.f32 0.0, %v648_v45  ;;  %v651_v51 = vadd.f32 %v872_v25, %v650_v49 }
 0x200   : > { %v682_v52 = vmul.f32 1.442695, %v668_v47  ;;  %v669_v53 = vsub.f32 0.0, %v659_v48 }
 0x201   : > { %v678_v54 = vmul.f32 1.442695, %v666_v50  ;;  %v667_v55 = vsub.f32 0.0, %v651_v51 }
 0x202   : > { %1093 = vpow2.f32 %v682_v52  ;;  %v684_v56 = vmul.f32 1.442695, %v669_v53 }
 0x203   : > { %1095 = vpow2.f32 %v678_v54  ;;  %v680_v57 = vmul.f32 1.442695, %v667_v55 }
 0x204   : > { %v1086_v58 = vpop.eup %1085  ;;  %1097 = vpow2.f32 %v684_v56 }
 0x205   : > { %v1088_v59 = vpop.eup %1087  ;;  %v688_v60 = vadd.f32 1.0, %v1086_v58  ;;  %1099 = vpow2.f32 %v680_v57 }
 0x206   : > { %v1090_v61 = vpop.eup %1089  ;;  %v686_v62 = vadd.f32 1.0, %v1088_v59 }
 0x207   : > { %v1092_v63 = vpop.eup %1091  ;;  %1101 = vrcp.f32 %v688_v60  ;;  %v689_v0 = vadd.f32 1.0, %v1090_v61 }
 0x208   : > { %1103 = vrcp.f32 %v686_v62  ;;  %v687_v1 = vadd.f32 1.0, %v1092_v63 }
 0x209   : > { %1105 = vrcp.f32 %v689_v0 }
 0x20a   : > { %1107 = vrcp.f32 %v687_v1 }
 0x20c   : > { %v1094_v2 = vpop.eup %1093 }
 0x20d   : > { %v1096_v3 = vpop.eup %1095  ;;  %v692_v4 = vadd.f32 1.0, %v1094_v2 }
 0x20e   : > { %v1098_v5 = vpop.eup %1097  ;;  %v690_v6 = vadd.f32 1.0, %v1096_v3 }
 0x20f   : > { %v1100_v7 = vpop.eup %1099  ;;  %1109 = vrcp.f32 %v692_v4  ;;  %v693_v8 = vadd.f32 1.0, %v1098_v5 }
 0x210   : > { %1111 = vrcp.f32 %v690_v6  ;;  %v691_v9 = vadd.f32 1.0, %v1100_v7 }
 0x211   : > { %v1102_v10 = vpop.eup %1101  ;;  %1113 = vrcp.f32 %v693_v8 }
 0x212   : > { %v1104_v11 = vpop.eup %1103  ;;  %1115 = vrcp.f32 %v691_v9  ;;  %v704_v14 = vmul.f32 %v1102_v10, %v1248_v27 }
 0x213   : > { %v1106_v12 = vpop.eup %1105  ;;  %v702_v16 = vmul.f32 %v1104_v11, %v1250_v29 }
 0x214   : > { %v1108_v13 = vpop.eup %1107  ;;  %v705_v15 = vmul.f32 %v1106_v12, %v1253_v32 }
 0x215   : > { %v703_v17 = vmul.f32 %v1108_v13, %v1256_v35 }
 0x216   : > { %v935_v18 = vpack.c.bf16 %v705_v15, %v704_v14 }
 0x217   : > { %v930_v19 = vpack.c.bf16 %v703_v17, %v702_v16 }
 0x218   : > { %950 = vst [vmem:[%s267_s24 + $0x8] sm:$0xff] %v935_v18  }
 0x219   : > { %v1110_v20 = vpop.eup %1109  ;;  %931 = vst [vmem:[%s267_s24] sm:$0xff] %v930_v19  }
 0x21a   : > { %v1112_v21 = vpop.eup %1111  ;;  %v708_v24 = vmul.f32 %v1110_v20, %v656_v43 }
 0x21b   : > { %v1114_v22 = vpop.eup %1113  ;;  %v706_v26 = vmul.f32 %v1112_v21, %v648_v45 }
 0x21c   : > { %v1116_v23 = vpop.eup %1115  ;;  %v709_v25 = vmul.f32 %v1114_v22, %v659_v48 }
 0x21d   : > { %v707_v27 = vmul.f32 %v1116_v23, %v651_v51 }
 0x21e   : > { %v945_v28 = vpack.c.bf16 %v709_v25, %v708_v24 }
 0x21f   : > { %v940_v29 = vpack.c.bf16 %v707_v27, %v706_v26 }
 0x220   : > { %952 = vst [vmem:[%s267_s24 + $0x18] sm:$0xff] %v945_v28  }
 0x221   : > { %951 = vst [vmem:[%s267_s24 + $0x10] sm:$0xff] %v940_v29  }
 0x222 PF: > { %s17_s21 = sadd.s32 1, %s1123_s21  }
 0x223   : > { %p14_p4 = scmp.ge.s32.totalorder %s17_s21, 4  }
 0x225   :  { %16 = sbr.rel (!%p14_p4) target bundleno = 1 (0x1), region = 82 }

// kernel: stage_forward.7
= control target key start
LH: loop header
LB: loop body
LE: loop exit
PB: predicated region body
PF: predicated region fallthrough
CT: control target
= control target key end

     0   :  { %s1285_s24 = smov 0   ;;  %s1463_s0 = inlined_call_operand.vmem [shape: bf16[128,128], index: 0, kind: input, shape index: {}]   ;;  %s1464_s1 = inlined_call_operand.vmem [shape: bf16[128,128], index: 1, kind: input, shape index: {}]   ;;  %s1465_s2 = inlined_call_operand.vmem [shape: bf16[128,128], index: 2, kind: input, shape index: {}]   ;;  %s1466_s3 = inlined_call_operand.vmem [shape: f32[1,128], index: 3, kind: input, shape index: {}]   ;;  %s1467_s4 = inlined_call_operand.vmem [shape: bf16[128,128], index: 4, kind: input, shape index: {}]   ;;  %s1468_s5 = inlined_call_operand.vmem [shape: bf16[128,128], index: 5, kind: input, shape index: {}]   ;;  %s1469_s6 = inlined_call_operand.vmem [shape: f32[1,128], index: 6, kind: input, shape index: {}]   ;;  %s1470_s7 = inlined_call_operand.vmem [shape: f32[128,128], index: 7, kind: output, shape index: {}]  }
   0x1 LB: > { %s954_s25 = sadd.s32 4294967295, %s1243_s24   ;;  %p958_p0 = scmp.ge.s32.totalorder %s1243_s24, 1  ;;  %s1243_s24 = sphi %s1285_s24, %s17_s24  }
   0x2   : > { %p249_p1 = scmp.lt.s32.totalorder %s1243_s24, 3 }
   0x4   : > { %p250_p2 = pnand %p958_p0, %p249_p1 }
   0x5   : > { %v1141_v0 = vld [vmem:[%s1465_s2] sm:$0xff] (!%p250_p2)   ;;  %s959_s28 = sshll.u32 (!%p250_p2), %s954_s25, 3  ;;  %v1142_v1 = vld [vmem:[%s1465_s2 + $0x8] sm:$0xff] (!%p250_p2)   ;;  %v1143_v2 = vld [vmem:[%s1465_s2 + $0x10] sm:$0xff] (!%p250_p2)  }
   0x6   : > { %253 = sbr.rel (%p250_p2) target bundleno = 568 (0x238), region = 48  ;;  %p287_p3 = scmp.lt.s32.totalorder (!%p250_p2), %s959_s28, 15  ;;  %1037 = vmatprep.subr.bf16.mxu0 (!%p250_p2), %v1141_v0  ;;  %v1144_v3 = vld [vmem:[%s1465_s2 + $0x18] sm:$0xff] (!%p250_p2)   ;;  %v1145_v5 = vld [vmem:[%s1465_s2 + $0x20] sm:$0xff] (!%p250_p2)   ;;  %v1146_v6 = vld [vmem:[%s1465_s2 + $0x28] sm:$0xff] (!%p250_p2)  }
   0x7   : > { %1038 = vmatpush3.bf16.msra.mxu0 (!%p250_p2), %v1141_v0  ;;  %v1147_v7 = vld [vmem:[%s1465_s2 + $0x30] sm:$0xff] (!%p250_p2)   ;;  %v1148_v8 = vld [vmem:[%s1465_s2 + $0x38] sm:$0xff] (!%p250_p2)   ;;  %v1153_v12 = vld [vmem:[%s1468_s5] sm:$0xff] (!%p250_p2)  }
   0x8   : > { %1039 = vmatprep.subr.bf16.mxu0 (!%p250_p2), %v1142_v1  ;;  %v1334_v13 = vld [vmem:[%s1467_s4] sm:$0xff] (!%p250_p2)   ;;  %1061 = vmatprep.subr.bf16.mxu1 (!%p250_p2), %v1153_v12  ;;  %v1155_v14 = vld [vmem:[%s1468_s5 + $0x8] sm:$0xff] (!%p250_p2)   ;;  %v1157_v16 = vld [vmem:[%s1468_s5 + $0x10] sm:$0xff] (!%p250_p2)  }
   0x9   : > { %1062 = vmatpush3.bf16.msra.mxu1 (!%p250_p2), %v1153_v12  ;;  %v1344_v15 = vld [vmem:[%s1467_s4 + $0x8] sm:$0xff] (!%p250_p2)   ;;  %v1354_v17 = vld [vmem:[%s1467_s4 + $0x10] sm:$0xff] (!%p250_p2)   ;;  %v1159_v18 = vld [vmem:[%s1468_s5 + $0x18] sm:$0xff] (!%p250_p2)  }
   0xa   : > { %1063 = vmatprep.subr.bf16.mxu1 (!%p250_p2), %v1155_v14  ;;  %v1364_v19 = vld [vmem:[%s1467_s4 + $0x18] sm:$0xff] (!%p250_p2)   ;;  %v1161_v20 = vld [vmem:[%s1468_s5 + $0x20] sm:$0xff] (!%p250_p2)   ;;  %v1163_v22 = vld [vmem:[%s1468_s5 + $0x28] sm:$0xff] (!%p250_p2)  }
   0xb   : > { %1040 = vmatpush3.bf16.msra.mxu0 (!%p250_p2), %v1142_v1  ;;  %v1374_v21 = vld [vmem:[%s1467_s4 + $0x20] sm:$0xff] (!%p250_p2)   ;;  %v1384_v23 = vld [vmem:[%s1467_s4 + $0x28] sm:$0xff] (!%p250_p2)   ;;  %v1165_v24 = vld [vmem:[%s1468_s5 + $0x30] sm:$0xff] (!%p250_p2)  }
   0xc   : > { %1041 = vmatprep.subr.bf16.mxu0 (!%p250_p2), %v1143_v2  ;;  %v1394_v25 = vld [vmem:[%s1467_s4 + $0x30] sm:$0xff] (!%p250_p2)   ;;  %v1167_v26 = vld [vmem:[%s1468_s5 + $0x38] sm:$0xff] (!%p250_p2)   ;;  %v965_v30 = vld [vmem:[%s1466_s3] ss:$0 sm:$0xff] (!%p250_p2) }
   0xd   : > { %s1472_s28 = smov (!%p287_p3, %s959_s28), 15  ;;  %1064 = vmatpush3.bf16.msra.mxu1 %v1155_v14  ;;  %v1404_v27 = vld [vmem:[%s1467_s4 + $0x38] sm:$0xff]  }
   0xe   : > { %s960_s10 = sshll.u32 %s1472_s28, 2  ;;  %1065 = vmatprep.subr.bf16.mxu1 %v1157_v16 }
   0xf   : > { %s290_s13 = scalar_lea.vmem %s1463_s0, %s960_s10  ;;  %1042 = vmatpush3.bf16.msra.mxu0 %v1143_v2  ;;  %s1323_s25 = scalar_lea.vmem %s1464_s1, %s960_s10 }
  0x10   : > { %v1149_v4 = vld [vmem:[%s290_s13] sm:$0xff]   ;;  %1043 = vmatprep.subr.bf16.mxu0 %v1144_v3  ;;  %v1150_v9 = vld [vmem:[%s290_s13 + $0x8] sm:$0xff]   ;;  %v1151_v10 = vld [vmem:[%s290_s13 + $0x10] sm:$0xff]  }
  0x11   : > { %1053 = vmatprep.mubr.bf16.mxu0 %v1149_v4  ;;  %v1152_v11 = vld [vmem:[%s290_s13 + $0x18] sm:$0xff]   ;;  %1066 = vmatpush3.bf16.msra.mxu1 %v1157_v16  ;;  %v1169_v28 = vld [vmem:[%s1323_s25] sm:$0xff]   ;;  %v1170_v29 = vld [vmem:[%s1323_s25 + $0x8] sm:$0xff]  }
  0x12   : > { %1067 = vmatprep.subr.bf16.mxu1 %v1159_v18 }
  0x13   : > { %1044 = vmatpush3.bf16.msra.mxu0 %v1144_v3 }
  0x14   : > { %1045 = vmatprep.subr.bf16.mxu0 %v1145_v5 }
  0x15   : > { %1068 = vmatpush3.bf16.msra.mxu1 %v1159_v18 }
  0x16   : > { %1069 = vmatprep.subr.bf16.mxu1 %v1161_v20 }
  0x17   : > { %1046 = vmatpush3.bf16.msra.mxu0 %v1145_v5 }
  0x18   : > { %1047 = vmatprep.subr.bf16.mxu0 %v1146_v6 }
  0x19   : > { %1070 = vmatpush3.bf16.msra.mxu1 %v1161_v20 }
  0x1a   : > { %1071 = vmatprep.subr.bf16.mxu1 %v1163_v22 }
  0x1b   : > { %1048 = vmatpush3.bf16.msra.mxu0 %v1146_v6 }
  0x1c   : > { %1049 = vmatprep.subr.bf16.mxu0 %v1147_v7 }
  0x1d   : > { %1072 = vmatpush3.bf16.msra.mxu1 %v1163_v22 }
  0x1e   : > { %1073 = vmatprep.subr.bf16.mxu1 %v1165_v24 }
  0x1f   : > { %1050 = vmatpush3.bf16.msra.mxu0 %v1147_v7 }
  0x20   : > { %1051 = vmatprep.subr.bf16.mxu0 %v1148_v8 }
  0x21   : > { %1074 = vmatpush3.bf16.msra.mxu1 %v1165_v24 }
  0x22   : > { %1075 = vmatprep.subr.bf16.mxu1 %v1167_v26 }
  0x23   : > { %1052 = vmatpush3.bf16.msra.mxu0 %v1148_v8 }
  0x24   : > { %1085 = vmatprep.subr.bf16.mxu0 %v1334_v13 }
  0x25   : > { %1076 = vmatpush3.bf16.msra.mxu1 %v1167_v26 }
  0x26   : > { %1054 = vmatmul.mubr.bf16.vlgmr.msra.gmra.mrb[0].mxu0 %v1150_v9  ;;  %1109 = vmatprep.subr.bf16.mxu1 %v1334_v13 }
  0x27   : > { %1057 = vmatprep.mubr.bf16.mxu0 %v1151_v10  ;;  %1086 = vmatpush3.bf16.msra.mxu0 %v1334_v13 }
  0x28   : > { %1087 = vmatprep.subr.bf16.mxu0 %v1344_v15 }
  0x2b   : > { %1088 = vmatpush3.bf16.msra.mxu0 %v1344_v15 }
  0x2c   : > { %1089 = vmatprep.subr.bf16.mxu0 %v1354_v17 }
  0x2e   : > { %1058 = vmatmul.mubr.bf16.gmra.mrb[4].mxu0 %v1152_v11 }
  0x2f   : > { %1090 = vmatpush3.bf16.msra.mxu0 %v1354_v17  ;;  %1101 = vmatprep.mubr.bf16.mxu0 %v1169_v28 }
  0x30   : > { %1091 = vmatprep.subr.bf16.mxu0 %v1364_v19 }
  0x33   : > { %1092 = vmatpush3.bf16.msra.mxu0 %v1364_v19 }
  0x34   : > { %1093 = vmatprep.subr.bf16.mxu0 %v1374_v21 }
  0x37   : > { %1094 = vmatpush3.bf16.msra.mxu0 %v1374_v21 }
  0x38   : > { %1095 = vmatprep.subr.bf16.mxu0 %v1384_v23 }
  0x3b   : > { %1096 = vmatpush3.bf16.msra.mxu0 %v1384_v23 }
  0x3c   : > { %1097 = vmatprep.subr.bf16.mxu0 %v1394_v25 }
  0x3f   : > { %1098 = vmatpush3.bf16.msra.mxu0 %v1394_v25 }
  0x40   : > { %1099 = vmatprep.subr.bf16.mxu0 %v1404_v27 }
  0x43   : > { %1100 = vmatpush3.bf16.msra.mxu0 %v1404_v27 }
  0x46   : > { %1102 = vmatmul.mubr.bf16.vlgmr.msra.gmra.mrb[8].mxu0 %v1170_v29 }
  0xf9   : > { %v1055_v31 = vpop.f32.mrb[0].mxu0 }
  0xfa   : > { %v1414_v32 = vadd.f32 %v1055_v31, %v965_v30  ;;  %v442_v33 = vpop.f32.mrb[1].mxu0 }
  0xfb   : > { %v1416_v34 = vadd.f32 %v965_v30, %v442_v33  ;;  %v1056_v35 = vpop.f32.mrb[2].mxu0 }
  0xfc   : > { %v475_v36 = vsub.f32 0.0, %v1414_v32  ;;  %v1419_v37 = vadd.f32 %v1056_v35, %v965_v30  ;;  %v445_v38 = vpop.f32.mrb[3].mxu0 }
  0xfd   : > { %v473_v39 = vsub.f32 0.0, %v1416_v34  ;;  %v446_v40 = vadd.f32 %v965_v30, %v445_v38 }
  0xfe   : > { %v485_v41 = vmul.f32 1.442695, %v475_v36  ;;  %v476_v42 = vsub.f32 0.0, %v1419_v37 }
  0xff   : > { %v481_v43 = vmul.f32 1.442695, %v473_v39  ;;  %v474_v44 = vsub.f32 0.0, %v446_v40 }
 0x100   : > { %1173 = vpow2.f32 %v485_v41  ;;  %v487_v45 = vmul.f32 1.442695, %v476_v42 }
 0x101   : > { %1175 = vpow2.f32 %v481_v43  ;;  %v483_v46 = vmul.f32 1.442695, %v474_v44  ;;  %v1059_v47 = vpop.f32.mrb[4].mxu0 }
 0x102   : > { %1177 = vpow2.f32 %v487_v45  ;;  %v467_v48 = vadd.f32 %v1059_v47, %v965_v30  ;;  %v458_v49 = vpop.f32.mrb[5].mxu0 }
 0x103   : > { %1179 = vpow2.f32 %v483_v46  ;;  %v459_v50 = vadd.f32 %v965_v30, %v458_v49  ;;  %v1060_v51 = vpop.f32.mrb[6].mxu0 }
 0x104   : > { %v479_v52 = vsub.f32 0.0, %v467_v48  ;;  %v470_v53 = vadd.f32 %v1060_v51, %v965_v30  ;;  %v461_v54 = vpop.f32.mrb[7].mxu0 }
 0x105   : > { %v477_v55 = vsub.f32 0.0, %v459_v50  ;;  %v462_v56 = vadd.f32 %v965_v30, %v461_v54 }
 0x106   : > { %v493_v57 = vmul.f32 1.442695, %v479_v52  ;;  %v480_v58 = vsub.f32 0.0, %v470_v53 }
 0x107   : > { %v489_v59 = vmul.f32 1.442695, %v477_v55  ;;  %v478_v60 = vsub.f32 0.0, %v462_v56 }
 0x108   : > { %1181 = vpow2.f32 %v493_v57  ;;  %v495_v61 = vmul.f32 1.442695, %v480_v58 }
 0x109   : > { %1183 = vpow2.f32 %v489_v59  ;;  %v491_v62 = vmul.f32 1.442695, %v478_v60 }
 0x10a   : > { %v1174_v63 = vpop.eup %1173  ;;  %1185 = vpow2.f32 %v495_v61 }
 0x10b   : > { %v1176_v0 = vpop.eup %1175  ;;  %v499_v1 = vadd.f32 1.0, %v1174_v63  ;;  %1187 = vpow2.f32 %v491_v62 }
 0x10c   : > { %v1178_v2 = vpop.eup %1177  ;;  %v497_v3 = vadd.f32 1.0, %v1176_v0 }
 0x10d   : > { %v1180_v4 = vpop.eup %1179  ;;  %1189 = vrcp.f32 %v499_v1  ;;  %v500_v5 = vadd.f32 1.0, %v1178_v2 }
 0x10e   : > { %1191 = vrcp.f32 %v497_v3  ;;  %v498_v6 = vadd.f32 1.0, %v1180_v4 }
 0x10f   : > { %1193 = vrcp.f32 %v500_v5 }
 0x110   : > { %1195 = vrcp.f32 %v498_v6 }
 0x112   : > { %v1182_v7 = vpop.eup %1181 }
 0x113   : > { %v1184_v8 = vpop.eup %1183  ;;  %v503_v9 = vadd.f32 1.0, %v1182_v7 }
 0x114   : > { %v1186_v10 = vpop.eup %1185  ;;  %v501_v11 = vadd.f32 1.0, %v1184_v8 }
 0x115   : > { %v1188_v12 = vpop.eup %1187  ;;  %1197 = vrcp.f32 %v503_v9  ;;  %v504_v14 = vadd.f32 1.0, %v1186_v10 }
 0x116   : > { %1199 = vrcp.f32 %v501_v11  ;;  %v502_v16 = vadd.f32 1.0, %v1188_v12 }
 0x117   : > { %v1190_v18 = vpop.eup %1189  ;;  %1201 = vrcp.f32 %v504_v14 }
 0x118   : > { %v1192_v20 = vpop.eup %1191  ;;  %1203 = vrcp.f32 %v502_v16  ;;  %v515_v26 = vmul.f32 %v1190_v18, %v1414_v32 }
 0x119   : > { %v1194_v22 = vpop.eup %1193  ;;  %v513_v29 = vmul.f32 %v1192_v20, %v1416_v34 }
 0x11a   : > { %v1196_v24 = vpop.eup %1195  ;;  %v516_v28 = vmul.f32 %v1194_v22, %v1419_v37 }
 0x11b   : > { %v514_v30 = vmul.f32 %v1196_v24, %v446_v40  ;;  %v1171_v40 = vld [vmem:[%s1323_s25 + $0x10] sm:$0xff]  }
 0x11c   : > { %v522_v31 = vpack.c.bf16 %v516_v28, %v515_v26 }
 0x11d   : > { %v521_v33 = vpack.c.bf16 %v514_v30, %v513_v29 }
 0x11f   : > { %v1198_v35 = vpop.eup %1197  ;;  %1077 = vmatprep.mubr.bf16.mxu1 %v521_v33 }
 0x120   : > { %v1200_v36 = vpop.eup %1199  ;;  %1078 = vmatmul.mubr.bf16.vlgmr.msra.gmra.mrb[0].mxu1 %v522_v31  ;;  %v519_v41 = vmul.f32 %v1198_v35, %v467_v48 }
 0x121   : > { %v1202_v38 = vpop.eup %1201  ;;  %1117 = vmatpush3.bf16.msra.mxu1 %v1334_v13  ;;  %v517_v32 = vmul.f32 %v1200_v36, %v459_v50  ;;  %v1172_v13 = vld [vmem:[%s1323_s25 + $0x18] sm:$0xff]   ;;  %s964_s25 = sshll.u32 %s1472_s28, 3 }
 0x122   : > { %v1204_v39 = vpop.eup %1203  ;;  %v520_v42 = vmul.f32 %v1202_v38, %v470_v53  ;;  %1110 = vmatprep.subr.bf16.mxu1 %v1344_v15  ;;  %s1450_s26 = scalar_lea.vmem %s1470_s7, %s964_s25 }
 0x123   : > { %v518_v37 = vmul.f32 %v1204_v39, %v462_v56 }
 0x124   : > { %v524_v43 = vpack.c.bf16 %v520_v42, %v519_v41 }
 0x125   : > { %1118 = vmatpush3.bf16.msra.mxu1 %v1344_v15  ;;  %v523_v34 = vpack.c.bf16 %v518_v37, %v517_v32  ;;  %v1103_v15 = vpop.f32.mrb[8].mxu0 }
 0x126   : > { %1111 = vmatprep.subr.bf16.mxu1 %v1354_v17 }
 0x127   : > { %1081 = vmatprep.mubr.bf16.mxu1 %v523_v34 }
 0x128   : > { %1082 = vmatmul.mubr.bf16.gmra.mrb[4].mxu1 %v524_v43 }
 0x129   : > { %1119 = vmatpush3.bf16.msra.mxu1 %v1354_v17  ;;  %1105 = vmatprep.mubr.bf16.mxu1 %v1171_v40  ;;  %v784_v17 = vpop.f32.mrb[9].mxu0 }
 0x12a   : > { %1112 = vmatprep.subr.bf16.mxu1 %v1364_v19 }
 0x12d   : > { %1120 = vmatpush3.bf16.msra.mxu1 %v1364_v19  ;;  %v1104_v19 = vpop.f32.mrb[10].mxu0 }
 0x12e   : > { %1113 = vmatprep.subr.bf16.mxu1 %v1374_v21  ;;  %v787_v44 = vpop.f32.mrb[11].mxu0 }
 0x131   : > { %1121 = vmatpush3.bf16.msra.mxu1 %v1374_v21  ;;  %v998_v21 = vld [vmem:[%s1469_s6] ss:$0 sm:$0xff] }
 0x132   : > { %1114 = vmatprep.subr.bf16.mxu1 %v1384_v23 }
 0x135   : > { %1122 = vmatpush3.bf16.msra.mxu1 %v1384_v23 }
 0x136   : > { %1115 = vmatprep.subr.bf16.mxu1 %v1394_v25 }
 0x139   : > { %1123 = vmatpush3.bf16.msra.mxu1 %v1394_v25 }
 0x13a   : > { %1116 = vmatprep.subr.bf16.mxu1 %v1404_v27 }
 0x13d   : > { %1124 = vmatpush3.bf16.msra.mxu1 %v1404_v27 }
 0x140   : > { %1106 = vmatmul.mubr.bf16.vlgmr.msra.gmra.mrb[4].mxu1 %v1172_v13 }
 0x1f3   : > { %v1079_v45 = vpop.f32.mrb[0].mxu1 }
 0x1f4   : > { %v793_v23 = vadd.f32 %v1103_v15, %v1079_v45  ;;  %v647_v46 = vpop.f32.mrb[1].mxu1 }
 0x1f5   : > { %v785_v47 = vadd.f32 %v784_v17, %v647_v46  ;;  %v1080_v48 = vpop.f32.mrb[2].mxu1 }
 0x1f6   : > { %v824_v25 = vadd.f32 %v998_v21, %v793_v23  ;;  %v796_v49 = vadd.f32 %v1104_v19, %v1080_v48  ;;  %v650_v50 = vpop.f32.mrb[3].mxu1 }
 0x1f7   : > { %v822_v51 = vadd.f32 %v998_v21, %v785_v47  ;;  %v788_v52 = vadd.f32 %v787_v44, %v650_v50 }
 0x1f8   : > { %v832_v27 = vsub.f32 0.0, %v824_v25  ;;  %v825_v53 = vadd.f32 %v998_v21, %v796_v49 }
 0x1f9   : > { %v830_v54 = vsub.f32 0.0, %v822_v51  ;;  %v823_v55 = vadd.f32 %v998_v21, %v788_v52 }
 0x1fa   : > { %v842_v56 = vmul.f32 1.442695, %v832_v27  ;;  %v833_v57 = vsub.f32 0.0, %v825_v53 }
 0x1fb   : > { %v838_v58 = vmul.f32 1.442695, %v830_v54  ;;  %v831_v59 = vsub.f32 0.0, %v823_v55 }
 0x1fc   : > { %1205 = vpow2.f32 %v842_v56  ;;  %v844_v60 = vmul.f32 1.442695, %v833_v57 }
 0x1fd   : > { %1207 = vpow2.f32 %v838_v58  ;;  %v840_v61 = vmul.f32 1.442695, %v831_v59 }
 0x1fe   : > { %1209 = vpow2.f32 %v844_v60 }
 0x1ff   : > { %1211 = vpow2.f32 %v840_v61 }
 0x206   : > { %v1206_v62 = vpop.eup %1205 }
 0x207   : > { %v1208_v63 = vpop.eup %1207  ;;  %v856_v0 = vadd.f32 1.0, %v1206_v62 }
 0x208   : > { %v1210_v1 = vpop.eup %1209  ;;  %v854_v2 = vadd.f32 1.0, %v1208_v63 }
 0x209   : > { %v1212_v3 = vpop.eup %1211  ;;  %1213 = vrcp.f32 %v856_v0  ;;  %v857_v4 = vadd.f32 1.0, %v1210_v1 }
 0x20a   : > { %1215 = vrcp.f32 %v854_v2  ;;  %v855_v5 = vadd.f32 1.0, %v1212_v3 }
 0x20b   : > { %1217 = vrcp.f32 %v857_v4 }
 0x20c   : > { %1219 = vrcp.f32 %v855_v5 }
 0x213   : > { %v1214_v6 = vpop.eup %1213  ;;  %v1107_v7 = vpop.f32.mrb[4].mxu1 }
 0x214   : > { %v1216_v8 = vpop.eup %1215  ;;  %v872_v9 = vmul.f32 %v1214_v6, %v824_v25  ;;  %v828_v10 = vadd.f32 %v1107_v7, %v998_v21  ;;  %v800_v11 = vpop.f32.mrb[5].mxu1 }
 0x215   : > { %v1218_v12 = vpop.eup %1217  ;;  %v870_v14 = vmul.f32 %v1216_v8, %v822_v51  ;;  %v826_v16 = vadd.f32 %v998_v21, %v800_v11  ;;  %v1108_v18 = vpop.f32.mrb[6].mxu1 }
 0x216   : > { %v1220_v20 = vpop.eup %1219  ;;  %880 = vst [vmem:[%s1450_s26 + $0x10] sm:$0xff] %v872_v9  ;;  %v873_v22 = vmul.f32 %v1218_v12, %v825_v53  ;;  %v836_v24 = vsub.f32 0.0, %v828_v10  ;;  %v829_v26 = vadd.f32 %v1108_v18, %v998_v21  ;;  %v803_v28 = vpop.f32.mrb[7].mxu1 }
 0x217   : > { %878 = vst [vmem:[%s1450_s26] sm:$0xff] %v870_v14  ;;  %v871_v29 = vmul.f32 %v1220_v20, %v823_v55  ;;  %v834_v30 = vsub.f32 0.0, %v826_v16  ;;  %v827_v31 = vadd.f32 %v998_v21, %v803_v28 }
 0x218   : > { %881 = vst [vmem:[%s1450_s26 + $0x18] sm:$0xff] %v873_v22  ;;  %v850_v33 = vmul.f32 1.442695, %v836_v24  ;;  %v837_v35 = vsub.f32 0.0, %v829_v26 }
 0x219   : > { %879 = vst [vmem:[%s1450_s26 + $0x8] sm:$0xff] %v871_v29  ;;  %v846_v36 = vmul.f32 1.442695, %v834_v30  ;;  %v835_v38 = vsub.f32 0.0, %v827_v31 }
 0x21a   : > { %1221 = vpow2.f32 %v850_v33  ;;  %v852_v39 = vmul.f32 1.442695, %v837_v35 }
 0x21b   : > { %1223 = vpow2.f32 %v846_v36  ;;  %v848_v41 = vmul.f32 1.442695, %v835_v38 }
 0x21c   : > { %1225 = vpow2.f32 %v852_v39 }
 0x21d   : > { %1227 = vpow2.f32 %v848_v41 }
 0x224   : > { %v1222_v42 = vpop.eup %1221 }
 0x225   : > { %v1224_v32 = vpop.eup %1223  ;;  %v860_v37 = vadd.f32 1.0, %v1222_v42 }
 0x226   : > { %v1226_v43 = vpop.eup %1225  ;;  %v858_v34 = vadd.f32 1.0, %v1224_v32 }
 0x227   : > { %v1228_v40 = vpop.eup %1227  ;;  %1229 = vrcp.f32 %v860_v37  ;;  %v861_v13 = vadd.f32 1.0, %v1226_v43 }
 0x228   : > { %1231 = vrcp.f32 %v858_v34  ;;  %v859_v15 = vadd.f32 1.0, %v1228_v40 }
 0x229   : > { %1233 = vrcp.f32 %v861_v13 }
 0x22a   : > { %1235 = vrcp.f32 %v859_v15 }
 0x231   : > { %v1230_v17 = vpop.eup %1229 }
 0x232   : > { %v1232_v19 = vpop.eup %1231  ;;  %v876_v44 = vmul.f32 %v1230_v17, %v828_v10 }
 0x233   : > { %v1234_v45 = vpop.eup %1233  ;;  %v874_v21 = vmul.f32 %v1232_v19, %v826_v16 }
 0x234   : > { %v1236_v23 = vpop.eup %1235  ;;  %884 = vst [vmem:[%s1450_s26 + $0x30] sm:$0xff] %v876_v44  ;;  %v877_v46 = vmul.f32 %v1234_v45, %v829_v26 }
 0x235   : > { %882 = vst [vmem:[%s1450_s26 + $0x20] sm:$0xff] %v874_v21  ;;  %v875_v47 = vmul.f32 %v1236_v23, %v827_v31 }
 0x236   : > { %885 = vst [vmem:[%s1450_s26 + $0x38] sm:$0xff] %v877_v46 }
 0x237   : > { %883 = vst [vmem:[%s1450_s26 + $0x28] sm:$0xff] %v875_v47 }
 0x238 PF: > { %s17_s24 = sadd.s32 1, %s1243_s24  }
 0x239   : > { %p14_p4 = scmp.ge.s32.totalorder %s17_s24, 4  }
 0x23b   :  { %16 = sbr.rel (!%p14_p4) target bundleno = 1 (0x1), region = 81 }

// kernel: stage_forward.6
= control target key start
LH: loop header
LB: loop body
LE: loop exit
PB: predicated region body
PF: predicated region fallthrough
CT: control target
= control target key end

     0   :  { %s2380_s15 = smov 0   ;;  %s2382_s16 = smov 0   ;;  %s2719_s0 = inlined_call_operand.vmem [shape: bf16[128,1152], index: 0, kind: input, shape index: {}]   ;;  %s2720_s1 = inlined_call_operand.vmem [shape: bf16[1152,128], index: 1, kind: input, shape index: {}]   ;;  %s2721_s2 = inlined_call_operand.vmem [shape: f32[1,128], index: 2, kind: input, shape index: {}]   ;;  %s2722_s3 = inlined_call_operand.vmem [shape: bf16[128,128], index: 3, kind: input, shape index: {}]   ;;  %s2723_s4 = inlined_call_operand.vmem [shape: bf16[128,128], index: 4, kind: output, shape index: {}]  }
   0x1   :  { %s2384_s17 = smov 0  }
   0x2 LB: > { %s33_s18 = sadd.s32 1, %s2349_s16  ;;  %p1762_p0 = scmp.ge.s32.totalorder %s2353_s17, 1  ;;  %s2353_s17 = sphi %s2384_s17, %s14_s17   ;;  %s2349_s16 = sphi %s2382_s16, %s2725_s16   ;;  %s2345_s15 = sphi %s2380_s15, %s2724_s15  }
   0x3   : > { %p35_p1 = scmp.ge.s32.totalorder %s33_s18, 2  ;;  %p232_p2 = scmp.lt.s32.totalorder %s2353_s17, 3 }
   0x5   : > { %s2727_s18 = smov (%p35_p1, %s33_s18), 0  ;;  %p233_p3 = pnand %p1762_p0, %p232_p2 }
   0x6   : > { %v2175_v0 = vld [vmem:[%s2720_s1 + $0x40] sm:$0xff] (!%p233_p3)   ;;  %v2179_v4 = vld [vmem:[%s2720_s1 + $0x48] sm:$0xff] (!%p233_p3)   ;;  %v2183_v8 = vld [vmem:[%s2720_s1 + $0x50] sm:$0xff] (!%p233_p3)   ;;  %s1763_s27 = sshll.u32 (!%p233_p3), %s2345_s15, 3 }
   0x7   : > { %236 = sbr.rel (%p233_p3) target bundleno = 363 (0x16b), region = 36  ;;  %v2176_v1 = vld [vmem:[%s2720_s1 + $0xc0] sm:$0xff] (!%p233_p3)   ;;  %1938 = vmatprep.subr.bf16.mxu0 (!%p233_p3), %v2175_v0  ;;  %v2180_v5 = vld [vmem:[%s2720_s1 + $0xc8] sm:$0xff] (!%p233_p3)   ;;  %v2184_v9 = vld [vmem:[%s2720_s1 + $0xd0] sm:$0xff] (!%p233_p3)   ;;  %p287_p4 = scmp.lt.s32.totalorder (!%p233_p3), %s1763_s27, 15 }
   0x8   : > { %v2177_v2 = vld [vmem:[%s2720_s1] sm:$0xff] (!%p233_p3)   ;;  %1978 = vmatprep.subr.bf16.mxu1 (!%p233_p3), %v2176_v1  ;;  %v2181_v6 = vld [vmem:[%s2720_s1 + $0x8] sm:$0xff] (!%p233_p3)   ;;  %v2185_v10 = vld [vmem:[%s2720_s1 + $0x10] sm:$0xff] (!%p233_p3)  }
   0x9   : > { %v2178_v3 = vld [vmem:[%s2720_s1 + $0x80] sm:$0xff] (!%p233_p3)   ;;  %1939 = vmatpush3.bf16.msra.mxu0 (!%p233_p3), %v2177_v2  ;;  %v2182_v7 = vld [vmem:[%s2720_s1 + $0x88] sm:$0xff] (!%p233_p3)   ;;  %v2186_v11 = vld [vmem:[%s2720_s1 + $0x90] sm:$0xff] (!%p233_p3)  }
   0xa   : > { %1979 = vmatpush3.bf16.msra.mxu1 (!%p233_p3), %v2178_v3  ;;  %1940 = vmatprep.subr.bf16.mxu0 (!%p233_p3), %v2179_v4  ;;  %v2187_v12 = vld [vmem:[%s2720_s1 + $0x58] sm:$0xff] (!%p233_p3)   ;;  %v2191_v16 = vld [vmem:[%s2720_s1 + $0x60] sm:$0xff] (!%p233_p3)   ;;  %v2195_v20 = vld [vmem:[%s2720_s1 + $0x68] sm:$0xff] (!%p233_p3)  }
   0xb   : > { %1980 = vmatprep.subr.bf16.mxu1 (!%p233_p3), %v2180_v5  ;;  %v2188_v13 = vld [vmem:[%s2720_s1 + $0xd8] sm:$0xff] (!%p233_p3)   ;;  %v2192_v17 = vld [vmem:[%s2720_s1 + $0xe0] sm:$0xff] (!%p233_p3)   ;;  %v2196_v21 = vld [vmem:[%s2720_s1 + $0xe8] sm:$0xff] (!%p233_p3)  }
   0xc   : > { %v2189_v14 = vld [vmem:[%s2720_s1 + $0x18] sm:$0xff] (!%p233_p3)   ;;  %v2193_v18 = vld [vmem:[%s2720_s1 + $0x20] sm:$0xff] (!%p233_p3)   ;;  %v2197_v22 = vld [vmem:[%s2720_s1 + $0x28] sm:$0xff] (!%p233_p3)  }
   0xd   : > { %1941 = vmatpush3.bf16.msra.mxu0 (!%p233_p3), %v2181_v6  ;;  %v2190_v15 = vld [vmem:[%s2720_s1 + $0x98] sm:$0xff] (!%p233_p3)   ;;  %v2194_v19 = vld [vmem:[%s2720_s1 + $0xa0] sm:$0xff] (!%p233_p3)   ;;  %v2198_v23 = vld [vmem:[%s2720_s1 + $0xa8] sm:$0xff] (!%p233_p3)  }
   0xe   : > { %1981 = vmatpush3.bf16.msra.mxu1 %v2182_v7  ;;  %1942 = vmatprep.subr.bf16.mxu0 %v2183_v8  ;;  %s2729_s27 = smov (!%p287_p4, %s1763_s27), 15  ;;  %v2199_v24 = vld [vmem:[%s2720_s1 + $0x70] sm:$0xff]   ;;  %v2203_v28 = vld [vmem:[%s2720_s1 + $0x78] sm:$0xff]   ;;  %v2213_v36 = vld [vmem:[%s2720_s1 + $0x140] sm:$0xff]  }
   0xf   : > { %1982 = vmatprep.subr.bf16.mxu1 %v2184_v9  ;;  %v2200_v25 = vld [vmem:[%s2720_s1 + $0xf0] sm:$0xff]   ;;  %s2150_s28 = smul.u32 36, %s2729_s27  ;;  %v2204_v29 = vld [vmem:[%s2720_s1 + $0xf8] sm:$0xff]   ;;  %v2214_v37 = vld [vmem:[%s2720_s1 + $0x1c0] sm:$0xff]   ;;  %s1766_s14 = sshll.u32 %s2729_s27, 2 }
  0x10   : > { %v2201_v26 = vld [vmem:[%s2720_s1 + $0x30] sm:$0xff]   ;;  %v2205_v30 = vld [vmem:[%s2720_s1 + $0x38] sm:$0xff]   ;;  %v2215_v38 = vld [vmem:[%s2720_s1 + $0x100] sm:$0xff]   ;;  %s316_s21 = scalar_lea.vmem %s2722_s3, %s1766_s14  ;;  %s325_s24 = scalar_lea.vmem %s2723_s4, %s1766_s14 }
  0x11   : > { %1943 = vmatpush3.bf16.msra.mxu0 %v2185_v10  ;;  %v2202_v27 = vld [vmem:[%s2720_s1 + $0xb0] sm:$0xff]   ;;  %s2497_s12 = scalar_lea.vmem %s2719_s0, %s2150_s28  ;;  %v2206_v31 = vld [vmem:[%s2720_s1 + $0xb8] sm:$0xff]   ;;  %v2216_v39 = vld [vmem:[%s2720_s1 + $0x180] sm:$0xff]  }
  0x12   : > { %1983 = vmatpush3.bf16.msra.mxu1 %v2186_v11  ;;  %1944 = vmatprep.subr.bf16.mxu0 %v2187_v12  ;;  %v2207_v32 = vld [vmem:[%s2497_s12] ss:$36 sps:$4 sm:$0xff]   ;;  %v2210_v34 = vld [vmem:[%s2497_s12 + $0x8] ss:$36 sps:$4 sm:$0xff]   ;;  %v2223_v45 = vld [vmem:[%s2497_s12 + $0x54] ss:$36 sps:$4 sm:$0xff]  }
  0x13   : > { %1984 = vmatprep.subr.bf16.mxu1 %v2188_v13  ;;  %v2209_v33 = vld [vmem:[%s2497_s12 + $0x4] ss:$36 sps:$4 sm:$0xff]   ;;  %v2212_v35 = vld [vmem:[%s2497_s12 + $0xc] ss:$36 sps:$4 sm:$0xff]   ;;  %v2231_v52 = vld [vmem:[%s2720_s1 + $0x158] sm:$0xff]  }
  0x14   : > { %1180 = vmatprep.mubr.bf16.mxu0 %v2209_v33  ;;  %1245 = vmatprep.mubr.bf16.mxu1 %v2212_v35  ;;  %v2217_v40 = vld [vmem:[%s2720_s1 + $0x148] sm:$0xff]   ;;  %v2226_v47 = vld [vmem:[%s2497_s12 + $0x50] ss:$36 sps:$4 sm:$0xff]   ;;  %v2232_v53 = vld [vmem:[%s2720_s1 + $0x1d8] sm:$0xff]  }
  0x15   : > { %1945 = vmatpush3.bf16.msra.mxu0 %v2189_v14  ;;  %v2218_v41 = vld [vmem:[%s2720_s1 + $0x1c8] sm:$0xff]   ;;  %v2227_v48 = vld [vmem:[%s2720_s1 + $0x150] sm:$0xff]   ;;  %v2233_v54 = vld [vmem:[%s2720_s1 + $0x118] sm:$0xff]  }
  0x16   : > { %1985 = vmatpush3.bf16.msra.mxu1 %v2190_v15  ;;  %1946 = vmatprep.subr.bf16.mxu0 %v2191_v16  ;;  %v2219_v42 = vld [vmem:[%s2720_s1 + $0x108] sm:$0xff]   ;;  %v2228_v49 = vld [vmem:[%s2720_s1 + $0x1d0] sm:$0xff]   ;;  %v2234_v55 = vld [vmem:[%s2720_s1 + $0x198] sm:$0xff]  }
  0x17   : > { %1986 = vmatprep.subr.bf16.mxu1 %v2192_v17  ;;  %v2220_v43 = vld [vmem:[%s2720_s1 + $0x188] sm:$0xff]   ;;  %v2229_v50 = vld [vmem:[%s2720_s1 + $0x110] sm:$0xff]   ;;  %v2237_v57 = vld [vmem:[%s2497_s12 + $0x9c] ss:$36 sps:$4 sm:$0xff]  }
  0x18   : > { %v2221_v44 = vld [vmem:[%s2497_s12 + $0x4c] ss:$36 sps:$4 sm:$0xff]   ;;  %v2235_v56 = vld [vmem:[%s2497_s12 + $0x94] ss:$36 sps:$4 sm:$0xff]   ;;  %v2241_v60 = vld [vmem:[%s2720_s1 + $0x160] sm:$0xff]  }
  0x19   : > { %1947 = vmatpush3.bf16.msra.mxu0 %v2193_v18  ;;  %v2225_v46 = vld [vmem:[%s2497_s12 + $0x48] ss:$36 sps:$4 sm:$0xff]   ;;  %v2230_v51 = vld [vmem:[%s2720_s1 + $0x190] sm:$0xff]   ;;  %v2240_v59 = vld [vmem:[%s2497_s12 + $0x98] ss:$36 sps:$4 sm:$0xff]  }
  0x1a   : > { %1987 = vmatpush3.bf16.msra.mxu1 %v2194_v19  ;;  %1948 = vmatprep.subr.bf16.mxu0 %v2195_v20  ;;  %v2239_v58 = vld [vmem:[%s2497_s12 + $0x90] ss:$36 sps:$4 sm:$0xff]   ;;  %v2242_v61 = vld [vmem:[%s2720_s1 + $0x1e0] sm:$0xff]   ;;  %v2245_v0 = vld [vmem:[%s2720_s1 + $0x168] sm:$0xff]  }
  0x1b   : > { %1988 = vmatprep.subr.bf16.mxu1 %v2196_v21  ;;  %v2243_v62 = vld [vmem:[%s2720_s1 + $0x120] sm:$0xff]   ;;  %v2246_v1 = vld [vmem:[%s2720_s1 + $0x1e8] sm:$0xff]   ;;  %v2253_v6 = vld [vmem:[%s2497_s12 + $0xd8] ss:$36 sps:$4 sm:$0xff]  }
  0x1c   : > { %v2244_v63 = vld [vmem:[%s2720_s1 + $0x1a0] sm:$0xff]   ;;  %v2247_v2 = vld [vmem:[%s2720_s1 + $0x128] sm:$0xff]   ;;  %v2255_v8 = vld [vmem:[%s2720_s1 + $0x170] sm:$0xff]  }
  0x1d   : > { %1949 = vmatpush3.bf16.msra.mxu0 %v2197_v22  ;;  %v2248_v3 = vld [vmem:[%s2720_s1 + $0x1a8] sm:$0xff]   ;;  %v2249_v4 = vld [vmem:[%s2497_s12 + $0xdc] ss:$36 sps:$4 sm:$0xff]   ;;  %v2256_v9 = vld [vmem:[%s2720_s1 + $0x1f0] sm:$0xff]  }
  0x1e   : > { %1989 = vmatpush3.bf16.msra.mxu1 %v2198_v23  ;;  %1950 = vmatprep.subr.bf16.mxu0 %v2199_v24  ;;  %v2251_v5 = vld [vmem:[%s2497_s12 + $0xe4] ss:$36 sps:$4 sm:$0xff]   ;;  %v2257_v10 = vld [vmem:[%s2720_s1 + $0x130] sm:$0xff]   ;;  %v2259_v12 = vld [vmem:[%s2720_s1 + $0x178] sm:$0xff]  }
  0x1f   : > { %1990 = vmatprep.subr.bf16.mxu1 %v2200_v25  ;;  %v2254_v7 = vld [vmem:[%s2497_s12 + $0xe0] ss:$36 sps:$4 sm:$0xff]   ;;  %v2258_v11 = vld [vmem:[%s2720_s1 + $0x1b0] sm:$0xff]   ;;  %v2260_v13 = vld [vmem:[%s2720_s1 + $0x1f8] sm:$0xff]  }
  0x20   : > { %v2261_v14 = vld [vmem:[%s2720_s1 + $0x138] sm:$0xff]   ;;  %v2263_v16 = vld [vmem:[%s2497_s12 + $0x10] ss:$36 sps:$4 sm:$0xff]   ;;  %v2269_v20 = vld [vmem:[%s2720_s1 + $0x200] sm:$0xff]  }
  0x21   : > { %1951 = vmatpush3.bf16.msra.mxu0 %v2201_v26  ;;  %v2262_v15 = vld [vmem:[%s2720_s1 + $0x1b8] sm:$0xff]   ;;  %v2270_v21 = vld [vmem:[%s2720_s1 + $0x208] sm:$0xff]   ;;  %v2276_v25 = vld [vmem:[%s2497_s12 + $0x60] ss:$36 sps:$4 sm:$0xff]  }
  0x22   : > { %1991 = vmatpush3.bf16.msra.mxu1 %v2202_v27  ;;  %1952 = vmatprep.subr.bf16.mxu0 %v2203_v28  ;;  %v2265_v17 = vld [vmem:[%s2497_s12 + $0x14] ss:$36 sps:$4 sm:$0xff]   ;;  %v2268_v19 = vld [vmem:[%s2497_s12 + $0x1c] ss:$36 sps:$4 sm:$0xff]   ;;  %v2273_v23 = vld [vmem:[%s2497_s12 + $0x64] ss:$36 sps:$4 sm:$0xff]  }
  0x23   : > { %1992 = vmatprep.subr.bf16.mxu1 %v2204_v29  ;;  %v2266_v18 = vld [vmem:[%s2497_s12 + $0x18] ss:$36 sps:$4 sm:$0xff]   ;;  %v2277_v26 = vld [vmem:[%s2720_s1 + $0x210] sm:$0xff]   ;;  %v2279_v27 = vld [vmem:[%s2497_s12 + $0xa4] ss:$36 sps:$4 sm:$0xff]  }
  0x24   : > { %v2271_v22 = vld [vmem:[%s2497_s12 + $0x5c] ss:$36 sps:$4 sm:$0xff]   ;;  %v2281_v28 = vld [vmem:[%s2497_s12 + $0xac] ss:$36 sps:$4 sm:$0xff]  }
  0x25   : > { %1953 = vmatpush3.bf16.msra.mxu0 %v2205_v30  ;;  %v2275_v24 = vld [vmem:[%s2497_s12 + $0x58] ss:$36 sps:$4 sm:$0xff]   ;;  %v2283_v30 = vld [vmem:[%s2497_s12 + $0xa0] ss:$36 sps:$4 sm:$0xff]   ;;  %v2287_v33 = vld [vmem:[%s2497_s12 + $0xec] ss:$36 sps:$4 sm:$0xff]  }
  0x26   : > { %1993 = vmatpush3.bf16.msra.mxu1 %v2206_v31  ;;  %2018 = vmatprep.subr.bf16.mxu0 %v2213_v36  ;;  %v2278_v29 = vld [vmem:[%s2720_s1 + $0x218] sm:$0xff]   ;;  %v2284_v31 = vld [vmem:[%s2497_s12 + $0xa8] ss:$36 sps:$4 sm:$0xff]  }
  0x27   : > { %2058 = vmatprep.subr.bf16.mxu1 %v2214_v37  ;;  %v2286_v35 = vld [vmem:[%s2720_s1 + $0x228] sm:$0xff]   ;;  %v2293_v37 = vld [vmem:[%s2720_s1 + $0x230] sm:$0xff]  }
  0x28   : > { %1181 = vmatmul.mubr.bf16.vlgmr.msra.gmra.mrb[0].mxu0 %v2207_v32  ;;  %v2285_v32 = vld [vmem:[%s2720_s1 + $0x220] sm:$0xff]   ;;  %v2291_v36 = vld [vmem:[%s2497_s12 + $0xe8] ss:$36 sps:$4 sm:$0xff]  }
  0x29   : > { %1246 = vmatmul.mubr.bf16.vlgmr.msra.gmra.mrb[0].mxu1 %v2210_v34  ;;  %2019 = vmatpush3.bf16.msra.mxu0 %v2215_v38  ;;  %v2289_v34 = vld [vmem:[%s2497_s12 + $0xf4] ss:$36 sps:$4 sm:$0xff]  }
  0x2a   : > { %2059 = vmatpush3.bf16.msra.mxu1 %v2216_v39  ;;  %2020 = vmatprep.subr.bf16.mxu0 %v2217_v40  ;;  %v2292_v38 = vld [vmem:[%s2497_s12 + $0xf0] ss:$36 sps:$4 sm:$0xff]   ;;  %v2295_v39 = vld [vmem:[%s2497_s12 + $0x20] ss:$36 sps:$4 sm:$0xff]  }
  0x2b   : > { %2060 = vmatprep.subr.bf16.mxu1 %v2218_v41  ;;  %1188 = vmatprep.mubr.bf16.mxu0 %v2221_v44  ;;  %v2296_v40 = vld [vmem:[%s2497_s12 + $0xb0] ss:$36 sps:$4 sm:$0xff]   ;;  %v2294_v41 = vld [vmem:[%s2720_s1 + $0x238] sm:$0xff]  }
  0x2c   : > { %1253 = vmatprep.mubr.bf16.mxu1 %v2223_v45 }
  0x2d   : > { %2021 = vmatpush3.bf16.msra.mxu0 %v2219_v42  ;;  %v2297_v42 = vld [vmem:[%s2497_s12 + $0x68] ss:$36 sps:$4 sm:$0xff]  }
  0x2e   : > { %2061 = vmatpush3.bf16.msra.mxu1 %v2220_v43  ;;  %2022 = vmatprep.subr.bf16.mxu0 %v2227_v48  ;;  %v2298_v43 = vld [vmem:[%s2497_s12 + $0xf8] ss:$36 sps:$4 sm:$0xff]  }
  0x2f   : > { %2062 = vmatprep.subr.bf16.mxu1 %v2228_v49 }
  0x30   : > { %1189 = vmatmul.mubr.bf16.gmra.mrb[4].mxu0 %v2225_v46 }
  0x31   : > { %1254 = vmatmul.mubr.bf16.gmra.mrb[4].mxu1 %v2226_v47  ;;  %2023 = vmatpush3.bf16.msra.mxu0 %v2229_v50 }
  0x32   : > { %2063 = vmatpush3.bf16.msra.mxu1 %v2230_v51  ;;  %2024 = vmatprep.subr.bf16.mxu0 %v2231_v52 }
  0x33   : > { %2064 = vmatprep.subr.bf16.mxu1 %v2232_v53  ;;  %1196 = vmatprep.mubr.bf16.mxu0 %v2235_v56 }
  0x34   : > { %1261 = vmatprep.mubr.bf16.mxu1 %v2237_v57 }
  0x35   : > { %2025 = vmatpush3.bf16.msra.mxu0 %v2233_v54 }
  0x36   : > { %2065 = vmatpush3.bf16.msra.mxu1 %v2234_v55  ;;  %2026 = vmatprep.subr.bf16.mxu0 %v2241_v60 }
  0x37   : > { %2066 = vmatprep.subr.bf16.mxu1 %v2242_v61 }
  0x38   : > { %1197 = vmatmul.mubr.bf16.gmra.mrb[8].mxu0 %v2239_v58 }
  0x39   : > { %1262 = vmatmul.mubr.bf16.gmra.mrb[8].mxu1 %v2240_v59  ;;  %2027 = vmatpush3.bf16.msra.mxu0 %v2243_v62 }
  0x3a   : > { %2067 = vmatpush3.bf16.msra.mxu1 %v2244_v63  ;;  %2028 = vmatprep.subr.bf16.mxu0 %v2245_v0 }
  0x3b   : > { %2068 = vmatprep.subr.bf16.mxu1 %v2246_v1  ;;  %1204 = vmatprep.mubr.bf16.mxu0 %v2249_v4 }
  0x3c   : > { %1269 = vmatprep.mubr.bf16.mxu1 %v2251_v5 }
  0x3d   : > { %2029 = vmatpush3.bf16.msra.mxu0 %v2247_v2 }
  0x3e   : > { %2069 = vmatpush3.bf16.msra.mxu1 %v2248_v3  ;;  %2030 = vmatprep.subr.bf16.mxu0 %v2255_v8 }
  0x3f   : > { %2070 = vmatprep.subr.bf16.mxu1 %v2256_v9 }
  0x40   : > { %1205 = vmatmul.mubr.bf16.gmra.mrb[12].mxu0 %v2253_v6 }
  0x41   : > { %1270 = vmatmul.mubr.bf16.gmra.mrb[12].mxu1 %v2254_v7  ;;  %2031 = vmatpush3.bf16.msra.mxu0 %v2257_v10 }
  0x42   : > { %2071 = vmatpush3.bf16.msra.mxu1 %v2258_v11  ;;  %2032 = vmatprep.subr.bf16.mxu0 %v2259_v12 }
  0x43   : > { %2072 = vmatprep.subr.bf16.mxu1 %v2260_v13  ;;  %1310 = vmatprep.mubr.bf16.mxu0 %v2265_v17 }
  0x44   : > { %1375 = vmatprep.mubr.bf16.mxu1 %v2268_v19 }
  0x45   : > { %2033 = vmatpush3.bf16.msra.mxu0 %v2261_v14 }
  0x46   : > { %2073 = vmatpush3.bf16.msra.mxu1 %v2262_v15  ;;  %2110 = vmatprep.subr.bf16.mxu0 %v2269_v20 }
  0x47   : > { %2134 = vmatprep.subr.bf16.mxu1 %v2269_v20 }
  0x48   : > { %1311 = vmatmul.mubr.bf16.vlgmr.msra.gmra.mrb[16].mxu0 %v2263_v16 }
  0x49   : > { %1376 = vmatmul.mubr.bf16.vlgmr.msra.gmra.mrb[16].mxu1 %v2266_v18  ;;  %2111 = vmatpush3.bf16.msra.mxu0 %v2269_v20 }
  0x4a   : > { %2142 = vmatpush3.bf16.msra.mxu1 %v2269_v20  ;;  %2112 = vmatprep.subr.bf16.mxu0 %v2270_v21 }
  0x4b   : > { %2135 = vmatprep.subr.bf16.mxu1 %v2270_v21  ;;  %1318 = vmatprep.mubr.bf16.mxu0 %v2271_v22 }
  0x4c   : > { %1383 = vmatprep.mubr.bf16.mxu1 %v2273_v23 }
  0x4d   : > { %2113 = vmatpush3.bf16.msra.mxu0 %v2270_v21 }
  0x4e   : > { %2143 = vmatpush3.bf16.msra.mxu1 %v2270_v21  ;;  %2114 = vmatprep.subr.bf16.mxu0 %v2277_v26 }
  0x4f   : > { %2136 = vmatprep.subr.bf16.mxu1 %v2277_v26 }
  0x50   : > { %1319 = vmatmul.mubr.bf16.gmra.mrb[20].mxu0 %v2275_v24 }
  0x51   : > { %1384 = vmatmul.mubr.bf16.gmra.mrb[20].mxu1 %v2276_v25  ;;  %1326 = vmatprep.mubr.bf16.mxu0 %v2279_v27 }
  0x52   : > { %2115 = vmatpush3.bf16.msra.mxu0 %v2277_v26  ;;  %1391 = vmatprep.mubr.bf16.mxu1 %v2281_v28 }
  0x53   : > { %2144 = vmatpush3.bf16.msra.mxu1 %v2277_v26  ;;  %2116 = vmatprep.subr.bf16.mxu0 %v2278_v29 }
  0x54   : > { %2137 = vmatprep.subr.bf16.mxu1 %v2278_v29 }
  0x56   : > { %2117 = vmatpush3.bf16.msra.mxu0 %v2278_v29 }
  0x57   : > { %2145 = vmatpush3.bf16.msra.mxu1 %v2278_v29  ;;  %2118 = vmatprep.subr.bf16.mxu0 %v2285_v32 }
  0x58   : > { %1327 = vmatmul.mubr.bf16.gmra.mrb[24].mxu0 %v2283_v30  ;;  %2138 = vmatprep.subr.bf16.mxu1 %v2285_v32 }
  0x59   : > { %1392 = vmatmul.mubr.bf16.gmra.mrb[24].mxu1 %v2284_v31  ;;  %1334 = vmatprep.mubr.bf16.mxu0 %v2287_v33 }
  0x5a   : > { %2119 = vmatpush3.bf16.msra.mxu0 %v2285_v32  ;;  %1399 = vmatprep.mubr.bf16.mxu1 %v2289_v34 }
  0x5b   : > { %2146 = vmatpush3.bf16.msra.mxu1 %v2285_v32  ;;  %2120 = vmatprep.subr.bf16.mxu0 %v2286_v35 }
  0x5c   : > { %2139 = vmatprep.subr.bf16.mxu1 %v2286_v35 }
  0x5e   : > { %2121 = vmatpush3.bf16.msra.mxu0 %v2286_v35 }
  0x5f   : > { %2147 = vmatpush3.bf16.msra.mxu1 %v2286_v35  ;;  %2122 = vmatprep.subr.bf16.mxu0 %v2293_v37 }
  0x60   : > { %1335 = vmatmul.mubr.bf16.gmra.mrb[28].mxu0 %v2291_v36  ;;  %2140 = vmatprep.subr.bf16.mxu1 %v2293_v37 }
  0x61   : > { %1400 = vmatmul.mubr.bf16.gmra.mrb[28].mxu1 %v2292_v38  ;;  %2126 = vmatprep.mubr.bf16.mxu0 %v2295_v39 }
  0x62   : > { %2123 = vmatpush3.bf16.msra.mxu0 %v2293_v37  ;;  %2130 = vmatprep.mubr.bf16.mxu1 %v2296_v40 }
  0x63   : > { %2148 = vmatpush3.bf16.msra.mxu1 %v2293_v37  ;;  %2124 = vmatprep.subr.bf16.mxu0 %v2294_v41 }
  0x64   : > { %2141 = vmatprep.subr.bf16.mxu1 %v2294_v41 }
  0x66   : > { %2125 = vmatpush3.bf16.msra.mxu0 %v2294_v41 }
  0x67   : > { %2149 = vmatpush3.bf16.msra.mxu1 %v2294_v41 }
  0x69   : > { %2127 = vmatmul.mubr.bf16.vlgmr.msra.gmra.mrb[32].mxu0 %v2297_v42 }
  0x6a   : > { %2131 = vmatmul.mubr.bf16.vlgmr.msra.gmra.mrb[32].mxu1 %v2298_v43 }
  0xfb   : > { %v1954_v44 = vpop.f32.mrb[0].mxu0 }
  0xfc   : > { %v1994_v45 = vpop.f32.mrb[0].mxu1  ;;  %v1955_v46 = vpop.f32.mrb[1].mxu0 }
  0xfd   : > { %v1956_v47 = vadd.f32 %v1955_v46, %v1954_v44  ;;  %v1995_v48 = vpop.f32.mrb[1].mxu1  ;;  %v1957_v49 = vpop.f32.mrb[2].mxu0 }
  0xfe   : > { %v1996_v50 = vadd.f32 %v1995_v48, %v1994_v45  ;;  %v1997_v51 = vpop.f32.mrb[2].mxu1  ;;  %v1958_v52 = vpop.f32.mrb[3].mxu0 }
  0xff   : > { %v1959_v53 = vadd.f32 %v1958_v52, %v1957_v49  ;;  %v1998_v54 = vpop.f32.mrb[3].mxu1 }
 0x100   : > { %v1248_v55 = vadd.f32 %v1996_v50, %v1956_v47  ;;  %v1999_v56 = vadd.f32 %v1998_v54, %v1997_v51 }
 0x102   : > { %v1251_v57 = vadd.f32 %v1999_v56, %v1959_v53 }
 0x103   : > { %v1960_v58 = vpop.f32.mrb[4].mxu0 }
 0x104   : > { %v2000_v59 = vpop.f32.mrb[4].mxu1  ;;  %v1961_v60 = vpop.f32.mrb[5].mxu0 }
 0x105   : > { %v1962_v61 = vadd.f32 %v1961_v60, %v1960_v58  ;;  %v2001_v62 = vpop.f32.mrb[5].mxu1  ;;  %v1963_v63 = vpop.f32.mrb[6].mxu0 }
 0x106   : > { %v2002_v0 = vadd.f32 %v2001_v62, %v2000_v59  ;;  %v2003_v1 = vpop.f32.mrb[6].mxu1  ;;  %v1964_v2 = vpop.f32.mrb[7].mxu0 }
 0x107   : > { %v1965_v3 = vadd.f32 %v1964_v2, %v1963_v63  ;;  %v2004_v4 = vpop.f32.mrb[7].mxu1 }
 0x108   : > { %v1256_v5 = vadd.f32 %v2002_v0, %v1962_v61  ;;  %v2005_v6 = vadd.f32 %v2004_v4, %v2003_v1 }
 0x10a   : > { %v1259_v7 = vadd.f32 %v2005_v6, %v1965_v3 }
 0x10b   : > { %v1966_v8 = vpop.f32.mrb[8].mxu0 }
 0x10c   : > { %v2006_v9 = vpop.f32.mrb[8].mxu1  ;;  %v1967_v10 = vpop.f32.mrb[9].mxu0 }
 0x10d   : > { %v1968_v11 = vadd.f32 %v1967_v10, %v1966_v8  ;;  %v2007_v12 = vpop.f32.mrb[9].mxu1  ;;  %v1969_v13 = vpop.f32.mrb[10].mxu0 }
 0x10e   : > { %v2008_v14 = vadd.f32 %v2007_v12, %v2006_v9  ;;  %v2009_v15 = vpop.f32.mrb[10].mxu1  ;;  %v1970_v16 = vpop.f32.mrb[11].mxu0 }
 0x10f   : > { %v1971_v17 = vadd.f32 %v1970_v16, %v1969_v13  ;;  %v2010_v18 = vpop.f32.mrb[11].mxu1 }
 0x110   : > { %v1264_v19 = vadd.f32 %v2008_v14, %v1968_v11  ;;  %v2011_v20 = vadd.f32 %v2010_v18, %v2009_v15 }
 0x112   : > { %v1267_v21 = vadd.f32 %v2011_v20, %v1971_v17 }
 0x113   : > { %v1972_v22 = vpop.f32.mrb[12].mxu0 }
 0x114   : > { %v2012_v23 = vpop.f32.mrb[12].mxu1  ;;  %v1973_v24 = vpop.f32.mrb[13].mxu0 }
 0x115   : > { %v2013_v25 = vpop.f32.mrb[13].mxu1  ;;  %v1974_v26 = vadd.f32 %v1973_v24, %v1972_v22  ;;  %v1975_v28 = vpop.f32.mrb[14].mxu0 }
 0x116   : > { %v2014_v27 = vadd.f32 %v2013_v25, %v2012_v23  ;;  %v2015_v29 = vpop.f32.mrb[14].mxu1  ;;  %v1976_v30 = vpop.f32.mrb[15].mxu0 }
 0x117   : > { %v2016_v31 = vpop.f32.mrb[15].mxu1  ;;  %v1977_v33 = vadd.f32 %v1976_v30, %v1975_v28 }
 0x118   : > { %v1272_v32 = vadd.f32 %v2014_v27, %v1974_v26  ;;  %v2017_v34 = vadd.f32 %v2016_v31, %v2015_v29 }
 0x11a   : > { %v1275_v35 = vadd.f32 %v2017_v34, %v1977_v33 }
 0x11b   : > { %v2034_v36 = vpop.f32.mrb[16].mxu0 }
 0x11c   : > { %v2035_v37 = vpop.f32.mrb[17].mxu0  ;;  %v2074_v38 = vpop.f32.mrb[16].mxu1 }
 0x11d   : > { %v2036_v39 = vadd.f32 %v2035_v37, %v2034_v36  ;;  %v2037_v40 = vpop.f32.mrb[18].mxu0  ;;  %v2075_v41 = vpop.f32.mrb[17].mxu1 }
 0x11e   : > { %v2038_v42 = vpop.f32.mrb[19].mxu0  ;;  %v2076_v44 = vadd.f32 %v2075_v41, %v2074_v38  ;;  %v2077_v45 = vpop.f32.mrb[18].mxu1 }
 0x11f   : > { %v1313_v43 = vadd.f32 %v2036_v39, %v1248_v55  ;;  %v2039_v46 = vadd.f32 %v2038_v42, %v2037_v40  ;;  %v2078_v47 = vpop.f32.mrb[19].mxu1  ;;  %v1877_v39 = vld [vmem:[%s2721_s2] ss:$0 sm:$0xff] }
 0x120   : > { %v2079_v49 = vadd.f32 %v2078_v47, %v2077_v45 }
 0x121   : > { %v1316_v48 = vadd.f32 %v2039_v46, %v1251_v57  ;;  %v1378_v50 = vadd.f32 %v2076_v44, %v1313_v43 }
 0x123   : > { %v2040_v51 = vpop.f32.mrb[20].mxu0  ;;  %v2661_v52 = vadd.f32 %v2079_v49, %v1316_v48 }
 0x124   : > { %v2041_v53 = vpop.f32.mrb[21].mxu0  ;;  %v2080_v54 = vpop.f32.mrb[20].mxu1 }
 0x125   : > { %v2042_v56 = vadd.f32 %v2041_v53, %v2040_v51  ;;  %v2043_v58 = vpop.f32.mrb[22].mxu0  ;;  %v2081_v59 = vpop.f32.mrb[21].mxu1 }
 0x126   : > { %v2044_v60 = vpop.f32.mrb[23].mxu0  ;;  %v2082_v62 = vadd.f32 %v2081_v59, %v2080_v54  ;;  %v2083_v63 = vpop.f32.mrb[22].mxu1 }
 0x127   : > { %v1321_v61 = vadd.f32 %v2042_v56, %v1256_v5  ;;  %v2045_v55 = vadd.f32 %v2044_v60, %v2043_v58  ;;  %v2084_v0 = vpop.f32.mrb[23].mxu1 }
 0x128   : > { %v2085_v2 = vadd.f32 %v2084_v0, %v2083_v63 }
 0x129   : > { %v1324_v1 = vadd.f32 %v2045_v55, %v1259_v7  ;;  %v1386_v3 = vadd.f32 %v2082_v62, %v1321_v61 }
 0x12b   : > { %v2046_v57 = vpop.f32.mrb[24].mxu0  ;;  %v1389_v4 = vadd.f32 %v2085_v2, %v1324_v1 }
 0x12c   : > { %v2047_v6 = vpop.f32.mrb[25].mxu0  ;;  %v2086_v8 = vpop.f32.mrb[24].mxu1 }
 0x12d   : > { %v2048_v9 = vadd.f32 %v2047_v6, %v2046_v57  ;;  %v2049_v10 = vpop.f32.mrb[26].mxu0  ;;  %v2087_v11 = vpop.f32.mrb[25].mxu1 }
 0x12e   : > { %v2050_v12 = vpop.f32.mrb[27].mxu0  ;;  %v2088_v14 = vadd.f32 %v2087_v11, %v2086_v8  ;;  %v2089_v15 = vpop.f32.mrb[26].mxu1 }
 0x12f   : > { %v1329_v13 = vadd.f32 %v2048_v9, %v1264_v19  ;;  %v2051_v16 = vadd.f32 %v2050_v12, %v2049_v10  ;;  %v2090_v5 = vpop.f32.mrb[27].mxu1 }
 0x130   : > { %v2091_v18 = vadd.f32 %v2090_v5, %v2089_v15 }
 0x131   : > { %v1332_v17 = vadd.f32 %v2051_v16, %v1267_v21  ;;  %v1394_v20 = vadd.f32 %v2088_v14, %v1329_v13 }
 0x133   : > { %v2052_v22 = vpop.f32.mrb[28].mxu0  ;;  %v1397_v7 = vadd.f32 %v2091_v18, %v1332_v17 }
 0x134   : > { %v2053_v23 = vpop.f32.mrb[29].mxu0  ;;  %v2092_v24 = vpop.f32.mrb[28].mxu1 }
 0x135   : > { %v2054_v25 = vadd.f32 %v2053_v23, %v2052_v22  ;;  %v2055_v26 = vpop.f32.mrb[30].mxu0  ;;  %v2093_v27 = vpop.f32.mrb[29].mxu1 }
 0x136   : > { %v2056_v28 = vpop.f32.mrb[31].mxu0  ;;  %v2094_v30 = vadd.f32 %v2093_v27, %v2092_v24  ;;  %v2095_v31 = vpop.f32.mrb[30].mxu1 }
 0x137   : > { %v1337_v29 = vadd.f32 %v2054_v25, %v1272_v32  ;;  %v2057_v33 = vadd.f32 %v2056_v28, %v2055_v26  ;;  %v2096_v19 = vpop.f32.mrb[31].mxu1 }
 0x138   : > { %v2097_v36 = vadd.f32 %v2096_v19, %v2095_v31 }
 0x139   : > { %v1340_v34 = vadd.f32 %v2057_v33, %v1275_v35  ;;  %v1402_v37 = vadd.f32 %v2094_v30, %v1337_v29  ;;  %v1932_v33 = vld [vmem:[%s316_s21 + $0x8] sm:$0xff]  }
 0x13b   : > { %v1405_v38 = vadd.f32 %v2097_v36, %v1340_v34  ;;  %v1934_v34 = vld [vmem:[%s316_s21 + $0x18] sm:$0xff]  }
 0x13c   : > { %v2128_v21 = vpop.f32.mrb[32].mxu0 }
 0x13d   : > { %v1451_v40 = vadd.f32 %v2128_v21, %v1386_v3  ;;  %v2132_v41 = vpop.f32.mrb[32].mxu1  ;;  %v1442_v42 = vpop.f32.mrb[33].mxu0 }
 0x13e   : > { %v1467_v43 = vadd.f32 %v2132_v41, %v1402_v37  ;;  %v1443_v44 = vadd.f32 %v1442_v42, %v1378_v50  ;;  %v1458_v45 = vpop.f32.mrb[33].mxu1  ;;  %v2129_v32 = vpop.f32.mrb[34].mxu0  ;;  %v1897_v37 = vld [vmem:[%s316_s21] sm:$0xff]   ;;  %v1903_v41 = vunpack.c.h.bf16 %v1932_v33 }
 0x13f   : > { %v2666_v46 = vadd.f32 %v1877_v39, %v1451_v40  ;;  %v1459_v47 = vadd.f32 %v1458_v45, %v1394_v20  ;;  %v1454_v48 = vadd.f32 %v2129_v32, %v1389_v4  ;;  %v2133_v35 = vpop.f32.mrb[34].mxu1  ;;  %v1445_v49 = vpop.f32.mrb[35].mxu0  ;;  %v1933_v40 = vld [vmem:[%s316_s21 + $0x10] sm:$0xff]   ;;  %v1911_v45 = vunpack.c.h.bf16 %v1934_v34 }
 0x140   : > { %v2668_v51 = vadd.f32 %v1877_v39, %v1467_v43  ;;  %v2670_v53 = vadd.f32 %v1877_v39, %v1443_v44  ;;  %v1470_v54 = vadd.f32 %v2133_v35, %v1405_v38  ;;  %v1446_v56 = vadd.f32 %v1445_v49, %v2661_v52  ;;  %v1461_v58 = vpop.f32.mrb[35].mxu1 }
 0x141   : > { %v1517_v59 = vsub.f32 0.0, %v2666_v46  ;;  %v2674_v60 = vadd.f32 %v1877_v39, %v1459_v47  ;;  %v2676_v50 = vadd.f32 %v1877_v39, %v1454_v48  ;;  %v1462_v61 = vadd.f32 %v1461_v58, %v1397_v7 }
 0x142   : > { %v1521_v62 = vsub.f32 0.0, %v2668_v51  ;;  %v1515_v63 = vsub.f32 0.0, %v2670_v53  ;;  %v2680_v55 = vadd.f32 %v1877_v39, %v1470_v54  ;;  %v2682_v0 = vadd.f32 %v1877_v39, %v1446_v56 }
 0x143   : > { %v1527_v1 = vmul.f32 1.442695, %v1517_v59  ;;  %v1519_v2 = vsub.f32 0.0, %v2674_v60  ;;  %v1518_v52 = vsub.f32 0.0, %v2676_v50  ;;  %v2686_v3 = vadd.f32 %v1877_v39, %v1462_v61 }
 0x144   : > { %v1535_v57 = vmul.f32 1.442695, %v1521_v62  ;;  %v1523_v4 = vmul.f32 1.442695, %v1515_v63  ;;  %v1522_v6 = vsub.f32 0.0, %v2680_v55  ;;  %v1516_v8 = vsub.f32 0.0, %v2682_v0 }
 0x145   : > { %2299 = vpow2.f32 %v1527_v1  ;;  %v1531_v9 = vmul.f32 1.442695, %v1519_v2  ;;  %v1529_v10 = vmul.f32 1.442695, %v1518_v52  ;;  %v1520_v11 = vsub.f32 0.0, %v2686_v3 }
 0x146   : > { %2301 = vpow2.f32 %v1535_v57  ;;  %v1537_v12 = vmul.f32 1.442695, %v1522_v6  ;;  %v1525_v13 = vmul.f32 1.442695, %v1516_v8  ;;  %v1902_v39 = vunpack.c.l.bf16 %v1932_v33 }
 0x147   : > { %2303 = vpow2.f32 %v1523_v4  ;;  %v1533_v14 = vmul.f32 1.442695, %v1520_v11  ;;  %v1910_v44 = vunpack.c.l.bf16 %v1934_v34  ;;  %v1898_v48 = vunpack.c.l.bf16 %v1897_v37 }
 0x148   : > { %2305 = vpow2.f32 %v1531_v9  ;;  %v1899_v49 = vunpack.c.h.bf16 %v1897_v37  ;;  %v1907_v59 = vunpack.c.h.bf16 %v1933_v40 }
 0x149   : > { %2307 = vpow2.f32 %v1529_v10 }
 0x14a   : > { %2309 = vpow2.f32 %v1537_v12 }
 0x14b   : > { %2311 = vpow2.f32 %v1525_v13 }
 0x14c   : > { %2313 = vpow2.f32 %v1533_v14 }
 0x14f   : > { %v2300_v15 = vpop.eup %2299 }
 0x150   : > { %v2302_v16 = vpop.eup %2301  ;;  %v1541_v5 = vadd.f32 1.0, %v2300_v15 }
 0x151   : > { %v2304_v17 = vpop.eup %2303  ;;  %v1545_v18 = vadd.f32 1.0, %v2302_v16 }
 0x152   : > { %v2306_v20 = vpop.eup %2305  ;;  %2315 = vrcp.f32 %v1541_v5  ;;  %v1539_v22 = vadd.f32 1.0, %v2304_v17 }
 0x153   : > { %v2308_v7 = vpop.eup %2307  ;;  %2317 = vrcp.f32 %v1545_v18  ;;  %v1543_v23 = vadd.f32 1.0, %v2306_v20 }
 0x154   : > { %v2310_v24 = vpop.eup %2309  ;;  %2319 = vrcp.f32 %v1539_v22  ;;  %v1542_v25 = vadd.f32 1.0, %v2308_v7 }
 0x155   : > { %v2312_v26 = vpop.eup %2311  ;;  %2321 = vrcp.f32 %v1543_v23  ;;  %v1546_v27 = vadd.f32 1.0, %v2310_v24 }
 0x156   : > { %v2314_v28 = vpop.eup %2313  ;;  %2323 = vrcp.f32 %v1542_v25  ;;  %v1540_v29 = vadd.f32 1.0, %v2312_v26 }
 0x157   : > { %2325 = vrcp.f32 %v1546_v27  ;;  %v1544_v30 = vadd.f32 1.0, %v2314_v28 }
 0x158   : > { %2327 = vrcp.f32 %v1540_v29 }
 0x159   : > { %2329 = vrcp.f32 %v1544_v30 }
 0x15c   : > { %v2316_v31 = vpop.eup %2315 }
 0x15d   : > { %v2318_v19 = vpop.eup %2317  ;;  %v1557_v21 = vmul.f32 %v2316_v31, %v2666_v46  ;;  %v1906_v46 = vunpack.c.l.bf16 %v1933_v40 }
 0x15e   : > { %v2320_v36 = vpop.eup %2319  ;;  %v1561_v43 = vmul.f32 %v2318_v19, %v2668_v51 }
 0x15f   : > { %v2322_v38 = vpop.eup %2321  ;;  %v1555_v47 = vmul.f32 %v2320_v36, %v2670_v53  ;;  %v1581_v62 = vadd.f32 %v1902_v39, %v1557_v21 }
 0x160   : > { %v2324_v42 = vpop.eup %2323  ;;  %v1559_v56 = vmul.f32 %v2322_v38, %v2674_v60  ;;  %v1585_v1 = vadd.f32 %v1910_v44, %v1561_v43 }
 0x161   : > { %v2326_v32 = vpop.eup %2325  ;;  %v1558_v35 = vmul.f32 %v2324_v42, %v2676_v50  ;;  %v1579_v2 = vadd.f32 %v1898_v48, %v1555_v47 }
 0x162   : > { %v2328_v54 = vpop.eup %2327  ;;  %v1562_v58 = vmul.f32 %v2326_v32, %v2680_v55  ;;  %v1583_v57 = vadd.f32 %v1906_v46, %v1559_v56 }
 0x163   : > { %v2330_v61 = vpop.eup %2329  ;;  %v1582_v51 = vadd.f32 %v1903_v41, %v1558_v35  ;;  %v1556_v63 = vmul.f32 %v2328_v54, %v2682_v0 }
 0x164   : > { %v1586_v53 = vadd.f32 %v1911_v45, %v1562_v58  ;;  %v1560_v50 = vmul.f32 %v2330_v61, %v2686_v3 }
 0x165   : > { %v1920_v60 = vpack.c.bf16 %v1582_v51, %v1581_v62  ;;  %v1580_v52 = vadd.f32 %v1899_v49, %v1556_v63 }
 0x166   : > { %v1930_v55 = vpack.c.bf16 %v1586_v53, %v1585_v1  ;;  %v1584_v4 = vadd.f32 %v1907_v59, %v1560_v50 }
 0x167   : > { %1935 = vst [vmem:[%s325_s24 + $0x8] sm:$0xff] %v1920_v60   ;;  %v1915_v6 = vpack.c.bf16 %v1580_v52, %v1579_v2 }
 0x168   : > { %1937 = vst [vmem:[%s325_s24 + $0x18] sm:$0xff] %v1930_v55   ;;  %v1925_v8 = vpack.c.bf16 %v1584_v4, %v1583_v57 }
 0x169   : > { %1916 = vst [vmem:[%s325_s24] sm:$0xff] %v1915_v6  }
 0x16a   : > { %1936 = vst [vmem:[%s325_s24 + $0x10] sm:$0xff] %v1925_v8  }
 0x16b PF: > { %s14_s17 = sadd.s32 1, %s2353_s17   ;;  %s2724_s15 = smov %s2349_s16 }
 0x16c   : > { %p11_p5 = scmp.ge.s32.totalorder %s14_s17, 4   ;;  %s2725_s16 = smov %s2727_s18 }
 0x16e   :  { %13 = sbr.rel (!%p11_p5) target bundleno = 2 (0x2), region = 83 }

</bundles_post_ra>
